<compile_context>
chip_gen: v5e
topology: v5e:2x2
jax: 0.10.0
libtpu: 0.0.40
codegen_flags: <defaults>
</compile_context>

<pallas_src>
import numpy as np
import jax
import jax.numpy as jnp
from jax.experimental import pallas as pl
from jax.experimental.pallas import tpu as pltpu


# ----------------------------------------------------------------------------
# Helpers
# ----------------------------------------------------------------------------
def _round_up(x, m):
    return ((x + m - 1) // m) * m


def _vmem_capacity_bytes():
    try:
        info = pltpu.get_tpu_info()
        cap = getattr(info, "vmem_capacity_bytes", None)
        if cap:
            return int(cap)
    except Exception:
        pass
    return 64 << 20  # conservative (v7x-sized) fallback


_VMEM_PHYS = _vmem_capacity_bytes()
_TILE_CAP = 256 if _VMEM_PHYS > (64 << 20) else 128


def _pick_tile(n, *, align, cap, min_tiles=1):
    """Largest divisor of n that is <= cap, a multiple of `align`, and leaves
    at least `min_tiles` tiles; falls back to n (tiling is always exact)."""
    best = None
    for t in range(1, n + 1):
        if n % t:
            continue
        if t <= cap and t % align == 0 and (n // t) >= min_tiles:
            best = t
    return best if best is not None else n


def _dft_mats(n, kp):
    """Ortho-normalized rfft / irfft bases of length n, freq axis padded to kp."""
    k_real = n // 2 + 1
    assert kp >= k_real
    t = np.arange(n)
    k = np.arange(k_real)
    ang = 2.0 * np.pi * np.outer(t, k) / n            # (n, k_real)
    scale = 1.0 / np.sqrt(n)
    cos_f = np.zeros((n, kp), np.float32)
    sin_f = np.zeros((n, kp), np.float32)
    cos_f[:, :k_real] = np.cos(ang) * scale           # real =  x @ cos_f
    sin_f[:, :k_real] = np.sin(ang) * scale           # imag = -(x @ sin_f)
    c = np.full((k_real,), 2.0, dtype=np.float64)
    c[0] = 1.0
    if n % 2 == 0:
        c[-1] = 1.0                                   # DC / Nyquist not doubled
    icos = np.zeros((kp, n), np.float32)              # out = re @ icos + im @ isin
    isin = np.zeros((kp, n), np.float32)
    icos[:k_real] = c[:, None] * np.cos(ang.T) * scale
    isin[:k_real] = -c[:, None] * np.sin(ang.T) * scale
    return cos_f, sin_f, icos, isin


# ----------------------------------------------------------------------------
# Pallas kernel: one "1-D Fourier unit" branch.
#
# The 1x1 conv is linear over channels and the DFT is linear over the spatial
# axis, but LeakyReLU sits between conv and irfft, so the conv is moved in
# front of the *forward* DFT only:
#     y_o(k) = (sum_c Wre[o,c] x_c) @ cos  -  (sum_c Wim[o,c] x_c) @ sin
# then LeakyReLU(y), split real/imag output channels, irfft.
#
#   fft_last=True  (horizontal): x block (Ch, tS, L), FFT over L (lane dim),
#     all DFT work as ONE fused (Cout*tS, L) matmul pair per direction.
#   fft_last=False (vertical)  : x block (Ch, L, tS), FFT over L (sublane dim)
#     via pre-transposed bases (left-multiplication) - no HBM transpose.
# ----------------------------------------------------------------------------
def _make_branch_kernel(*, fft_last, ch, cout, co2, neg_slope=0.05):
    bf = jnp.bfloat16

    def kernel(x_ref, wre_ref, wim_ref, fcos_ref, fsin_ref, icos_ref, isin_ref,
               o_ref):
        fcos = fcos_ref[...]          # hor: (L, Kp)   vert: (Kp, L)   bf16
        fsin = fsin_ref[...]
        icos = icos_ref[...]          # hor: (Kp, L)   vert: (L, Kp)   bf16
        isin = isin_ref[...]
        xs = [x_ref[c] for c in range(ch)]            # bf16 spatial tiles

        def mix(w_ref, o):
            # 1x1 conv in the spatial domain: sum_c w[o,c] * x_c (VPU FMAs,
            # statically unrolled; weights are scalars read from SMEM).
            acc = w_ref[o, 0] * xs[0]
            for c in range(1, ch):
                acc = acc + w_ref[o, c] * xs[c]
            return acc.astype(bf)

        if fft_last:
            # ---------------- horizontal branch (FFT over lane dim) ----------
            ts = x_ref.shape[1]
            a_cat = jnp.concatenate([mix(wre_ref, o) for o in range(cout)], axis=0)
            b_cat = jnp.concatenate([mix(wim_ref, o) for o in range(cout)], axis=0)
            # forward rfft of the mixed signal: one fused matmul pair
            y = (jnp.dot(a_cat, fcos, preferred_element_type=jnp.float32)
                 - jnp.dot(b_cat, fsin, preferred_element_type=jnp.float32))
            y = jnp.where(y >= 0, y, neg_slope * y).astype(bf)   # LeakyReLU(0.05)
            yr = y[: co2 * ts]          # real-part output channels
            yi = y[co2 * ts:]           # imag-part output channels
            # irfft: one fused matmul pair
            out = (jnp.dot(yr, icos, preferred_element_type=jnp.float32)
                   + jnp.dot(yi, isin, preferred_element_type=jnp.float32))
            o_ref[...] = out.reshape(co2, ts, out.shape[-1]).astype(o_ref.dtype)
        else:
            # ---------------- vertical branch (FFT over sublane dim) ---------
            ys = []
            for o in range(cout):
                a = mix(wre_ref, o)
                b = mix(wim_ref, o)
                y = (jnp.dot(fcos, a, preferred_element_type=jnp.float32)
                     - jnp.dot(fsin, b, preferred_element_type=jnp.float32))
                ys.append(jnp.where(y >= 0, y, neg_slope * y).astype(bf))
            for o in range(co2):
                out = (jnp.dot(icos, ys[o], preferred_element_type=jnp.float32)
                       + jnp.dot(isin, ys[co2 + o], preferred_element_type=jnp.float32))
                o_ref[o] = out.astype(o_ref.dtype)

    return kernel


def _fourier_branch(x, wre, wim, fcos, fsin, icos, isin, *, fft_last):
    """x: (B, Ch, D1, D2) bf16 -> (B, Cout//2, D1, D2) f32 for one branch."""
    B, ch, d1, d2 = x.shape
    cout = wre.shape[0]
    co2 = cout // 2
    min_tiles = 1 if B >= 2 else 2          # keep both v7x TensorCores busy

    if fft_last:                             # FFT over D2 (=W), tile D1 (=H)
        L, S = d2, d1
        kp = fcos.shape[1]
        tS = _pick_tile(S, align=16, cap=_TILE_CAP, min_tiles=min_tiles)
        x_spec = pl.BlockSpec((None, ch, tS, L), lambda b, i: (b, 0, i, 0))
        o_spec = pl.BlockSpec((None, co2, tS, L), lambda b, i: (b, 0, i, 0))
    else:                                    # FFT over D1 (=H), tile D2 (=W)
        L, S = d1, d2
        kp = fcos.shape[0]
        tS = _pick_tile(S, align=128, cap=_TILE_CAP, min_tiles=min_tiles)
        x_spec = pl.BlockSpec((None, ch, L, tS), lambda b, i: (b, 0, 0, i))
        o_spec = pl.BlockSpec((None, co2, L, tS), lambda b, i: (b, 0, 0, i))
    n_tiles = S // tS

    kernel = _make_branch_kernel(fft_last=fft_last, ch=ch, cout=cout, co2=co2)

    def _const_spec(a):
        nd = a.ndim
        return pl.BlockSpec(a.shape, lambda b, i, _nd=nd: (0,) * _nd)

    smem_spec = pl.BlockSpec(memory_space=pltpu.MemorySpace.SMEM)
    out_shape = jax.ShapeDtypeStruct((B, co2, d1, d2), jnp.float32)

    # --- VMEM budget: <= 75% of physical (~48 MiB v7x, ~96 MiB v5e/v6e) ------
    xblk = ch * tS * L * 2
    oblk = co2 * tS * L * 4
    consts = 4 * L * kp * 2
    interm = cout * tS * max(L, kp) * 6
    est = 2 * (xblk + oblk + consts) + interm
    vmem_limit = int(min(max(4 * est, 32 << 20), (_VMEM_PHYS * 3) // 4))

    macs = B * S * (cout * ch * L            # spatial-domain 1x1 conv (re+im)
                    + 2 * cout * L * kp      # forward rfft of mixed signal
                    + 2 * co2 * kp * L)      # irfft
    cost = pl.CostEstimate(
        flops=int(4 * macs),
        transcendentals=0,
        bytes_accessed=int(x.size * x.dtype.itemsize
                           + B * co2 * d1 * d2 * 4
                           + 4 * L * kp * 2 + 2 * cout * ch * 4))

    return pl.pallas_call(
        kernel,
        out_shape=out_shape,
        grid_spec=pltpu.PrefetchScalarGridSpec(
            num_scalar_prefetch=0,
            grid=(B, n_tiles),
            in_specs=[x_spec, smem_spec, smem_spec,
                      _const_spec(fcos), _const_spec(fsin),
                      _const_spec(icos), _const_spec(isin)],
            out_specs=o_spec,
        ),
        compiler_params=pltpu.CompilerParams(
            dimension_semantics=("parallel", "parallel"),
            vmem_limit_bytes=vmem_limit,
        ),
        cost_estimate=cost,
    )(x, wre, wim, fcos, fsin, icos, isin)


# ----------------------------------------------------------------------------
# Full DualFourierUnit forward (spectral_pos_encoding=False, groups=1).
# ----------------------------------------------------------------------------
def dual_fourier_unit(x, w_hor, w_vert):
    """x: (B, C, H, W) f32; w_hor/w_vert: (Cout, C) 1x1-conv weights -> (B, Cout, H, W)."""
    B, C, H, W = x.shape
    cout = w_hor.shape[0]
    assert C % 2 == 0 and cout % 2 == 0
    ch = C // 2
    bf = jnp.bfloat16

    xb = x.astype(bf)
    x_h = xb[:, :ch]                       # horizontal half: FFT over W
    x_v = xb[:, ch:]                       # vertical half:   FFT over H

    # DFT bases, frequency axis zero-padded up to a multiple of 128 lanes.
    kpw = _round_up(W // 2 + 1, 128)
    kph = _round_up(H // 2 + 1, 128)
    cos_w, sin_w, icos_w, isin_w = _dft_mats(W, kpw)
    cos_h, sin_h, icos_h, isin_h = _dft_mats(H, kph)

    # Horizontal branch: right-multiplication (FFT dim is the lane dim).
    fcos_hor = jnp.asarray(cos_w, bf)      # (W, KpW)
    fsin_hor = jnp.asarray(sin_w, bf)
    icos_hor = jnp.asarray(icos_w, bf)     # (KpW, W)
    isin_hor = jnp.asarray(isin_w, bf)
    # Vertical branch: bases pre-transposed so the H-axis DFT is a standard
    # left-multiplication on the untransposed NCHW tile (no HBM transpose).
    fcos_ver = jnp.asarray(cos_h.T, bf)    # (KpH, H)
    fsin_ver = jnp.asarray(sin_h.T, bf)
    icos_ver = jnp.asarray(icos_h.T, bf)   # (H, KpH)
    isin_ver = jnp.asarray(isin_h.T, bf)

    # 1x1 conv weights split into real-input / imag-input halves (f32, SMEM).
    w_hor = jnp.asarray(w_hor, jnp.float32)
    w_vert = jnp.asarray(w_vert, jnp.float32)
    wre_h, wim_h = w_hor[:, :ch], w_hor[:, ch:]
    wre_v, wim_v = w_vert[:, :ch], w_vert[:, ch:]

    out_h = _fourier_branch(x_h, wre_h, wim_h, fcos_hor, fsin_hor,
                            icos_hor, isin_hor, fft_last=True)
    out_v = _fourier_branch(x_v, wre_v, wim_v, fcos_ver, fsin_ver,
                            icos_ver, isin_ver, fft_last=False)
    return jnp.concatenate([out_h, out_v], axis=1)


# ----------------------------------------------------------------------------
# Pure-JAX reference (mirrors the PyTorch forward exactly, f32 FFT).
# ----------------------------------------------------------------------------
def reference(x, w_hor, w_vert):
    B, C, H, W = x.shape
    Ch = C // 2
    Co2 = w_hor.shape[0] // 2
    hx, vx = x[:, :Ch], x[:, Ch:]

    hf = jnp.fft.rfft(hx, axis=-1, norm='ortho')
    hf = jnp.concatenate([hf.real, hf.imag], axis=1)
    vf = jnp.fft.rfft(vx, axis=-2, norm='ortho')
    vf = jnp.concatenate([vf.real, vf.imag], axis=1)

    def conv1x1(f, w):
        return jnp.einsum('bchw,oc->bohw', f, w)

    def lrelu(v):
        return jnp.where(v >= 0, v, 0.05 * v)

    hy = lrelu(conv1x1(hf, w_hor))
    vy = lrelu(conv1x1(vf, w_vert))

    hc = hy[:, :Co2] + 1j * hy[:, Co2:]
    vc = vy[:, :Co2] + 1j * vy[:, Co2:]
    ho = jnp.fft.irfft(hc, n=W, axis=-1, norm='ortho')
    vo = jnp.fft.irfft(vc, n=H, axis=-2, norm='ortho')
    return jnp.concatenate([ho, vo], axis=1)


# ----------------------------------------------------------------------------
# Deterministic init mirroring weight_norm(Conv2d(C, Cout, 1, bias=False)).
# ----------------------------------------------------------------------------
def _make_conv_weight(key, cout, cin):
    v = jax.random.normal(key, (cout, cin, 1, 1), jnp.float32) * 0.1
    norm = jnp.sqrt(jnp.sum(v * v, axis=(1, 2, 3), keepdims=True))
    w = norm * v / norm                    # weight_norm init: g = ||v|| -> w == v
    return w[:, :, 0, 0]                   # (Cout, Cin)


if __name__ == "__main__":
    B, C, H, W = 2, 4, 16, 16              # in_channels = out_channels = 4
    Cout = C

    key = jax.random.PRNGKey(0)
    k_x, k_h, k_v = jax.random.split(key, 3)
    x = jax.random.normal(k_x, (B, C, H, W), jnp.float32)
    w_hor = _make_conv_weight(k_h, Cout, C)
    w_vert = _make_conv_weight(k_v, Cout, C)

    out = jax.block_until_ready(jax.jit(dual_fourier_unit)(x, w_hor, w_vert))
    ref = jax.block_until_ready(reference(x, w_hor, w_vert))

    assert out.shape == (B, Cout, H, W), out.shape
    # bf16 MXU operands with f32 accumulation -> ~3% tolerance vs f32 FFT ref.
    np.testing.assert_allclose(np.asarray(out), np.asarray(ref),
                               rtol=3e-2, atol=3e-2)
    print("KERNEL_OK")
</pallas_src>

<mosaic_0001>
module attributes {stable_mosaic.version = 11 : i64} {
  func.func @kernel(%arg0: i32, %arg1: i32, %arg2: memref<1x2x16x16xbf16, #tpu.memory_space<vmem>>, %arg3: memref<4x2xf32, #tpu.memory_space<smem>>, %arg4: memref<4x2xf32, #tpu.memory_space<smem>>, %arg5: memref<128x16xbf16, #tpu.memory_space<vmem>>, %arg6: memref<128x16xbf16, #tpu.memory_space<vmem>>, %arg7: memref<16x128xbf16, #tpu.memory_space<vmem>>, %arg8: memref<16x128xbf16, #tpu.memory_space<vmem>>, %arg9: memref<1x2x16x16xf32, #tpu.memory_space<vmem>>) attributes {dimension_semantics = [#tpu.dimension_semantics<parallel>, #tpu.dimension_semantics<parallel>], iteration_bounds = array<i64: 2, 1>, scalar_prefetch = 0 : i64, scratch_operands = 0 : i64, tpu.core_type = #tpu.core_type<tc>, window_params = [{transform_indices = @transform_0, window_bounds = array<i64: 1, 2, 16, 16>}, {transform_indices = @transform_1, window_bounds = array<i64: 4, 2>}, {transform_indices = @transform_2, window_bounds = array<i64: 4, 2>}, {pipeline_mode = #tpu.pipeline_mode<synchronous>, transform_indices = @transform_3, window_bounds = array<i64: 128, 16>}, {pipeline_mode = #tpu.pipeline_mode<synchronous>, transform_indices = @transform_4, window_bounds = array<i64: 128, 16>}, {pipeline_mode = #tpu.pipeline_mode<synchronous>, transform_indices = @transform_5, window_bounds = array<i64: 16, 128>}, {pipeline_mode = #tpu.pipeline_mode<synchronous>, transform_indices = @transform_6, window_bounds = array<i64: 16, 128>}, {transform_indices = @transform_7, window_bounds = array<i64: 1, 2, 16, 16>}]} {
    %c0 = arith.constant 0 : index
    %c0_0 = arith.constant 0 : index
    %0 = vector.load %arg5[%c0, %c0_0] : memref<128x16xbf16, #tpu.memory_space<vmem>>, vector<128x16xbf16>
    %c0_1 = arith.constant 0 : index
    %c0_2 = arith.constant 0 : index
    %1 = vector.load %arg6[%c0_1, %c0_2] : memref<128x16xbf16, #tpu.memory_space<vmem>>, vector<128x16xbf16>
    %c0_3 = arith.constant 0 : index
    %c0_4 = arith.constant 0 : index
    %2 = vector.load %arg7[%c0_3, %c0_4] : memref<16x128xbf16, #tpu.memory_space<vmem>>, vector<16x128xbf16>
    %c0_5 = arith.constant 0 : index
    %c0_6 = arith.constant 0 : index
    %3 = vector.load %arg8[%c0_5, %c0_6] : memref<16x128xbf16, #tpu.memory_space<vmem>>, vector<16x128xbf16>
    %c0_7 = arith.constant 0 : index
    %c0_8 = arith.constant 0 : index
    %c0_9 = arith.constant 0 : index
    %c0_10 = arith.constant 0 : index
    %4 = vector.load %arg2[%c0_7, %c0_8, %c0_9, %c0_10] : memref<1x2x16x16xbf16, #tpu.memory_space<vmem>>, vector<1x1x16x16xbf16>
    %5 = vector.shape_cast %4 : vector<1x1x16x16xbf16> to vector<16x16xbf16>
    %c0_11 = arith.constant 0 : index
    %c1 = arith.constant 1 : index
    %c0_12 = arith.constant 0 : index
    %c0_13 = arith.constant 0 : index
    %6 = vector.load %arg2[%c0_11, %c1, %c0_12, %c0_13] : memref<1x2x16x16xbf16, #tpu.memory_space<vmem>>, vector<1x1x16x16xbf16>
    %7 = vector.shape_cast %6 : vector<1x1x16x16xbf16> to vector<16x16xbf16>
    %c0_14 = arith.constant 0 : index
    %c0_15 = arith.constant 0 : index
    %8 = memref.load %arg3[%c0_14, %c0_15] : memref<4x2xf32, #tpu.memory_space<smem>>
    %9 = arith.extf %5 : vector<16x16xbf16> to vector<16x16xf32>
    %10 = vector.broadcast %8 : f32 to vector<16x16xf32>
    %11 = arith.mulf %10, %9 : vector<16x16xf32>
    %c0_16 = arith.constant 0 : index
    %c1_17 = arith.constant 1 : index
    %12 = memref.load %arg3[%c0_16, %c1_17] : memref<4x2xf32, #tpu.memory_space<smem>>
    %13 = arith.extf %7 : vector<16x16xbf16> to vector<16x16xf32>
    %14 = vector.broadcast %12 : f32 to vector<16x16xf32>
    %15 = arith.mulf %14, %13 : vector<16x16xf32>
    %16 = arith.addf %11, %15 : vector<16x16xf32>
    %17 = arith.truncf %16 : vector<16x16xf32> to vector<16x16xbf16>
    %c0_18 = arith.constant 0 : index
    %c0_19 = arith.constant 0 : index
    %18 = memref.load %arg4[%c0_18, %c0_19] : memref<4x2xf32, #tpu.memory_space<smem>>
    %19 = arith.extf %5 : vector<16x16xbf16> to vector<16x16xf32>
    %20 = vector.broadcast %18 : f32 to vector<16x16xf32>
    %21 = arith.mulf %20, %19 : vector<16x16xf32>
    %c0_20 = arith.constant 0 : index
    %c1_21 = arith.constant 1 : index
    %22 = memref.load %arg4[%c0_20, %c1_21] : memref<4x2xf32, #tpu.memory_space<smem>>
    %23 = arith.extf %7 : vector<16x16xbf16> to vector<16x16xf32>
    %24 = vector.broadcast %22 : f32 to vector<16x16xf32>
    %25 = arith.mulf %24, %23 : vector<16x16xf32>
    %26 = arith.addf %21, %25 : vector<16x16xf32>
    %27 = arith.truncf %26 : vector<16x16xf32> to vector<16x16xbf16>
    %cst = arith.constant dense<0.000000e+00> : vector<128x16xf32>
    %28 = tpu.matmul %0, %17, %cst {dimension_numbers = #tpu.dot_dimension_numbers<[1], [0], [0], [1], [0, 0, 1, 1], [], []>} : vector<128x16xbf16>, vector<16x16xbf16>, vector<128x16xf32> -> vector<128x16xf32>
    %cst_22 = arith.constant dense<0.000000e+00> : vector<128x16xf32>
    %29 = tpu.matmul %1, %27, %cst_22 {dimension_numbers = #tpu.dot_dimension_numbers<[1], [0], [0], [1], [0, 0, 1, 1], [], []>} : vector<128x16xbf16>, vector<16x16xbf16>, vector<128x16xf32> -> vector<128x16xf32>
    %30 = arith.subf %28, %29 : vector<128x16xf32>
    %cst_23 = arith.constant 0.000000e+00 : f32
    %31 = vector.broadcast %cst_23 : f32 to vector<128x16xf32>
    %32 = arith.cmpf oge, %30, %31 : vector<128x16xf32>
    %cst_24 = arith.constant 5.000000e-02 : f32
    %33 = vector.broadcast %cst_24 : f32 to vector<128x16xf32>
    %34 = arith.mulf %33, %30 : vector<128x16xf32>
    %35 = arith.select %32, %30, %34 : vector<128x16xi1>, vector<128x16xf32>
    %36 = arith.truncf %35 : vector<128x16xf32> to vector<128x16xbf16>
    %c1_25 = arith.constant 1 : index
    %c0_26 = arith.constant 0 : index
    %37 = memref.load %arg3[%c1_25, %c0_26] : memref<4x2xf32, #tpu.memory_space<smem>>
    %38 = arith.extf %5 : vector<16x16xbf16> to vector<16x16xf32>
    %39 = vector.broadcast %37 : f32 to vector<16x16xf32>
    %40 = arith.mulf %39, %38 : vector<16x16xf32>
    %c1_27 = arith.constant 1 : index
    %c1_28 = arith.constant 1 : index
    %41 = memref.load %arg3[%c1_27, %c1_28] : memref<4x2xf32, #tpu.memory_space<smem>>
    %42 = arith.extf %7 : vector<16x16xbf16> to vector<16x16xf32>
    %43 = vector.broadcast %41 : f32 to vector<16x16xf32>
    %44 = arith.mulf %43, %42 : vector<16x16xf32>
    %45 = arith.addf %40, %44 : vector<16x16xf32>
    %46 = arith.truncf %45 : vector<16x16xf32> to vector<16x16xbf16>
    %c1_29 = arith.constant 1 : index
    %c0_30 = arith.constant 0 : index
    %47 = memref.load %arg4[%c1_29, %c0_30] : memref<4x2xf32, #tpu.memory_space<smem>>
    %48 = arith.extf %5 : vector<16x16xbf16> to vector<16x16xf32>
    %49 = vector.broadcast %47 : f32 to vector<16x16xf32>
    %50 = arith.mulf %49, %48 : vector<16x16xf32>
    %c1_31 = arith.constant 1 : index
    %c1_32 = arith.constant 1 : index
    %51 = memref.load %arg4[%c1_31, %c1_32] : memref<4x2xf32, #tpu.memory_space<smem>>
    %52 = arith.extf %7 : vector<16x16xbf16> to vector<16x16xf32>
    %53 = vector.broadcast %51 : f32 to vector<16x16xf32>
    %54 = arith.mulf %53, %52 : vector<16x16xf32>
    %55 = arith.addf %50, %54 : vector<16x16xf32>
    %56 = arith.truncf %55 : vector<16x16xf32> to vector<16x16xbf16>
    %cst_33 = arith.constant dense<0.000000e+00> : vector<128x16xf32>
    %57 = tpu.matmul %0, %46, %cst_33 {dimension_numbers = #tpu.dot_dimension_numbers<[1], [0], [0], [1], [0, 0, 1, 1], [], []>} : vector<128x16xbf16>, vector<16x16xbf16>, vector<128x16xf32> -> vector<128x16xf32>
    %cst_34 = arith.constant dense<0.000000e+00> : vector<128x16xf32>
    %58 = tpu.matmul %1, %56, %cst_34 {dimension_numbers = #tpu.dot_dimension_numbers<[1], [0], [0], [1], [0, 0, 1, 1], [], []>} : vector<128x16xbf16>, vector<16x16xbf16>, vector<128x16xf32> -> vector<128x16xf32>
    %59 = arith.subf %57, %58 : vector<128x16xf32>
    %cst_35 = arith.constant 0.000000e+00 : f32
    %60 = vector.broadcast %cst_35 : f32 to vector<128x16xf32>
    %61 = arith.cmpf oge, %59, %60 : vector<128x16xf32>
    %cst_36 = arith.constant 5.000000e-02 : f32
    %62 = vector.broadcast %cst_36 : f32 to vector<128x16xf32>
    %63 = arith.mulf %62, %59 : vector<128x16xf32>
    %64 = arith.select %61, %59, %63 : vector<128x16xi1>, vector<128x16xf32>
    %65 = arith.truncf %64 : vector<128x16xf32> to vector<128x16xbf16>
    %c2 = arith.constant 2 : index
    %c0_37 = arith.constant 0 : index
    %66 = memref.load %arg3[%c2, %c0_37] : memref<4x2xf32, #tpu.memory_space<smem>>
    %67 = arith.extf %5 : vector<16x16xbf16> to vector<16x16xf32>
    %68 = vector.broadcast %66 : f32 to vector<16x16xf32>
    %69 = arith.mulf %68, %67 : vector<16x16xf32>
    %c2_38 = arith.constant 2 : index
    %c1_39 = arith.constant 1 : index
    %70 = memref.load %arg3[%c2_38, %c1_39] : memref<4x2xf32, #tpu.memory_space<smem>>
    %71 = arith.extf %7 : vector<16x16xbf16> to vector<16x16xf32>
    %72 = vector.broadcast %70 : f32 to vector<16x16xf32>
    %73 = arith.mulf %72, %71 : vector<16x16xf32>
    %74 = arith.addf %69, %73 : vector<16x16xf32>
    %75 = arith.truncf %74 : vector<16x16xf32> to vector<16x16xbf16>
    %c2_40 = arith.constant 2 : index
    %c0_41 = arith.constant 0 : index
    %76 = memref.load %arg4[%c2_40, %c0_41] : memref<4x2xf32, #tpu.memory_space<smem>>
    %77 = arith.extf %5 : vector<16x16xbf16> to vector<16x16xf32>
    %78 = vector.broadcast %76 : f32 to vector<16x16xf32>
    %79 = arith.mulf %78, %77 : vector<16x16xf32>
    %c2_42 = arith.constant 2 : index
    %c1_43 = arith.constant 1 : index
    %80 = memref.load %arg4[%c2_42, %c1_43] : memref<4x2xf32, #tpu.memory_space<smem>>
    %81 = arith.extf %7 : vector<16x16xbf16> to vector<16x16xf32>
    %82 = vector.broadcast %80 : f32 to vector<16x16xf32>
    %83 = arith.mulf %82, %81 : vector<16x16xf32>
    %84 = arith.addf %79, %83 : vector<16x16xf32>
    %85 = arith.truncf %84 : vector<16x16xf32> to vector<16x16xbf16>
    %cst_44 = arith.constant dense<0.000000e+00> : vector<128x16xf32>
    %86 = tpu.matmul %0, %75, %cst_44 {dimension_numbers = #tpu.dot_dimension_numbers<[1], [0], [0], [1], [0, 0, 1, 1], [], []>} : vector<128x16xbf16>, vector<16x16xbf16>, vector<128x16xf32> -> vector<128x16xf32>
    %cst_45 = arith.constant dense<0.000000e+00> : vector<128x16xf32>
    %87 = tpu.matmul %1, %85, %cst_45 {dimension_numbers = #tpu.dot_dimension_numbers<[1], [0], [0], [1], [0, 0, 1, 1], [], []>} : vector<128x16xbf16>, vector<16x16xbf16>, vector<128x16xf32> -> vector<128x16xf32>
    %88 = arith.subf %86, %87 : vector<128x16xf32>
    %cst_46 = arith.constant 0.000000e+00 : f32
    %89 = vector.broadcast %cst_46 : f32 to vector<128x16xf32>
    %90 = arith.cmpf oge, %88, %89 : vector<128x16xf32>
    %cst_47 = arith.constant 5.000000e-02 : f32
    %91 = vector.broadcast %cst_47 : f32 to vector<128x16xf32>
    %92 = arith.mulf %91, %88 : vector<128x16xf32>
    %93 = arith.select %90, %88, %92 : vector<128x16xi1>, vector<128x16xf32>
    %94 = arith.truncf %93 : vector<128x16xf32> to vector<128x16xbf16>
    %c3 = arith.constant 3 : index
    %c0_48 = arith.constant 0 : index
    %95 = memref.load %arg3[%c3, %c0_48] : memref<4x2xf32, #tpu.memory_space<smem>>
    %96 = arith.extf %5 : vector<16x16xbf16> to vector<16x16xf32>
    %97 = vector.broadcast %95 : f32 to vector<16x16xf32>
    %98 = arith.mulf %97, %96 : vector<16x16xf32>
    %c3_49 = arith.constant 3 : index
    %c1_50 = arith.constant 1 : index
    %99 = memref.load %arg3[%c3_49, %c1_50] : memref<4x2xf32, #tpu.memory_space<smem>>
    %100 = arith.extf %7 : vector<16x16xbf16> to vector<16x16xf32>
    %101 = vector.broadcast %99 : f32 to vector<16x16xf32>
    %102 = arith.mulf %101, %100 : vector<16x16xf32>
    %103 = arith.addf %98, %102 : vector<16x16xf32>
    %104 = arith.truncf %103 : vector<16x16xf32> to vector<16x16xbf16>
    %c3_51 = arith.constant 3 : index
    %c0_52 = arith.constant 0 : index
    %105 = memref.load %arg4[%c3_51, %c0_52] : memref<4x2xf32, #tpu.memory_space<smem>>
    %106 = arith.extf %5 : vector<16x16xbf16> to vector<16x16xf32>
    %107 = vector.broadcast %105 : f32 to vector<16x16xf32>
    %108 = arith.mulf %107, %106 : vector<16x16xf32>
    %c3_53 = arith.constant 3 : index
    %c1_54 = arith.constant 1 : index
    %109 = memref.load %arg4[%c3_53, %c1_54] : memref<4x2xf32, #tpu.memory_space<smem>>
    %110 = arith.extf %7 : vector<16x16xbf16> to vector<16x16xf32>
    %111 = vector.broadcast %109 : f32 to vector<16x16xf32>
    %112 = arith.mulf %111, %110 : vector<16x16xf32>
    %113 = arith.addf %108, %112 : vector<16x16xf32>
    %114 = arith.truncf %113 : vector<16x16xf32> to vector<16x16xbf16>
    %cst_55 = arith.constant dense<0.000000e+00> : vector<128x16xf32>
    %115 = tpu.matmul %0, %104, %cst_55 {dimension_numbers = #tpu.dot_dimension_numbers<[1], [0], [0], [1], [0, 0, 1, 1], [], []>} : vector<128x16xbf16>, vector<16x16xbf16>, vector<128x16xf32> -> vector<128x16xf32>
    %cst_56 = arith.constant dense<0.000000e+00> : vector<128x16xf32>
    %116 = tpu.matmul %1, %114, %cst_56 {dimension_numbers = #tpu.dot_dimension_numbers<[1], [0], [0], [1], [0, 0, 1, 1], [], []>} : vector<128x16xbf16>, vector<16x16xbf16>, vector<128x16xf32> -> vector<128x16xf32>
    %117 = arith.subf %115, %116 : vector<128x16xf32>
    %cst_57 = arith.constant 0.000000e+00 : f32
    %118 = vector.broadcast %cst_57 : f32 to vector<128x16xf32>
    %119 = arith.cmpf oge, %117, %118 : vector<128x16xf32>
    %cst_58 = arith.constant 5.000000e-02 : f32
    %120 = vector.broadcast %cst_58 : f32 to vector<128x16xf32>
    %121 = arith.mulf %120, %117 : vector<128x16xf32>
    %122 = arith.select %119, %117, %121 : vector<128x16xi1>, vector<128x16xf32>
    %123 = arith.truncf %122 : vector<128x16xf32> to vector<128x16xbf16>
    %cst_59 = arith.constant dense<0.000000e+00> : vector<16x16xf32>
    %124 = tpu.matmul %2, %36, %cst_59 {dimension_numbers = #tpu.dot_dimension_numbers<[1], [0], [0], [1], [0, 0, 1, 1], [], []>} : vector<16x128xbf16>, vector<128x16xbf16>, vector<16x16xf32> -> vector<16x16xf32>
    %cst_60 = arith.constant dense<0.000000e+00> : vector<16x16xf32>
    %125 = tpu.matmul %3, %94, %cst_60 {dimension_numbers = #tpu.dot_dimension_numbers<[1], [0], [0], [1], [0, 0, 1, 1], [], []>} : vector<16x128xbf16>, vector<128x16xbf16>, vector<16x16xf32> -> vector<16x16xf32>
    %126 = arith.addf %124, %125 : vector<16x16xf32>
    %c0_61 = arith.constant 0 : index
    %c0_62 = arith.constant 0 : index
    %c0_63 = arith.constant 0 : index
    %c0_64 = arith.constant 0 : index
    %127 = vector.load %arg9[%c0_61, %c0_62, %c0_63, %c0_64] : memref<1x2x16x16xf32, #tpu.memory_space<vmem>>, vector<1x1x16x16xf32>
    %128 = vector.shape_cast %127 : vector<1x1x16x16xf32> to vector<16x16xf32>
    %129 = vector.shape_cast %126 : vector<16x16xf32> to vector<1x1x16x16xf32>
    tpu.vector_store %arg9[%c0_61, %c0_62, %c0_63, %c0_64], %129 {strides = array<i32>} : memref<1x2x16x16xf32, #tpu.memory_space<vmem>>, vector<1x1x16x16xf32>,
    %cst_65 = arith.constant dense<0.000000e+00> : vector<16x16xf32>
    %130 = tpu.matmul %2, %65, %cst_65 {dimension_numbers = #tpu.dot_dimension_numbers<[1], [0], [0], [1], [0, 0, 1, 1], [], []>} : vector<16x128xbf16>, vector<128x16xbf16>, vector<16x16xf32> -> vector<16x16xf32>
    %cst_66 = arith.constant dense<0.000000e+00> : vector<16x16xf32>
    %131 = tpu.matmul %3, %123, %cst_66 {dimension_numbers = #tpu.dot_dimension_numbers<[1], [0], [0], [1], [0, 0, 1, 1], [], []>} : vector<16x128xbf16>, vector<128x16xbf16>, vector<16x16xf32> -> vector<16x16xf32>
    %132 = arith.addf %130, %131 : vector<16x16xf32>
    %c0_67 = arith.constant 0 : index
    %c1_68 = arith.constant 1 : index
    %c0_69 = arith.constant 0 : index
    %c0_70 = arith.constant 0 : index
    %133 = vector.load %arg9[%c0_67, %c1_68, %c0_69, %c0_70] : memref<1x2x16x16xf32, #tpu.memory_space<vmem>>, vector<1x1x16x16xf32>
    %134 = vector.shape_cast %133 : vector<1x1x16x16xf32> to vector<16x16xf32>
    %135 = vector.shape_cast %132 : vector<16x16xf32> to vector<1x1x16x16xf32>
    tpu.vector_store %arg9[%c0_67, %c1_68, %c0_69, %c0_70], %135 {strides = array<i32>} : memref<1x2x16x16xf32, #tpu.memory_space<vmem>>, vector<1x1x16x16xf32>,
    return
  }
  func.func @transform_0(%arg0: i32, %arg1: i32) -> (i32, i32, i32, i32) {
    %c0_i32 = arith.constant 0 : i32
    %c0_i32_0 = arith.constant 0 : i32
    %c0_i32_1 = arith.constant 0 : i32
    return %arg0, %c0_i32, %c0_i32_0, %arg1 : i32, i32, i32, i32
  }
  func.func @transform_1(%arg0: i32, %arg1: i32) -> (i32, i32) {
    %c0_i32 = arith.constant 0 : i32
    %c0_i32_0 = arith.constant 0 : i32
    %c0_i32_1 = arith.constant 0 : i32
    return %c0_i32, %c0_i32_0 : i32, i32
  }
  func.func @transform_2(%arg0: i32, %arg1: i32) -> (i32, i32) {
    %c0_i32 = arith.constant 0 : i32
    %c0_i32_0 = arith.constant 0 : i32
    %c0_i32_1 = arith.constant 0 : i32
    return %c0_i32, %c0_i32_0 : i32, i32
  }
  func.func @transform_3(%arg0: i32, %arg1: i32) -> (i32, i32) {
    %c0_i32 = arith.constant 0 : i32
    %c0_i32_0 = arith.constant 0 : i32
    %c0_i32_1 = arith.constant 0 : i32
    return %c0_i32, %c0_i32_0 : i32, i32
  }
  func.func @transform_4(%arg0: i32, %arg1: i32) -> (i32, i32) {
    %c0_i32 = arith.constant 0 : i32
    %c0_i32_0 = arith.constant 0 : i32
    %c0_i32_1 = arith.constant 0 : i32
    return %c0_i32, %c0_i32_0 : i32, i32
  }
  func.func @transform_5(%arg0: i32, %arg1: i32) -> (i32, i32) {
    %c0_i32 = arith.constant 0 : i32
    %c0_i32_0 = arith.constant 0 : i32
    %c0_i32_1 = arith.constant 0 : i32
    return %c0_i32, %c0_i32_0 : i32, i32
  }
  func.func @transform_6(%arg0: i32, %arg1: i32) -> (i32, i32) {
    %c0_i32 = arith.constant 0 : i32
    %c0_i32_0 = arith.constant 0 : i32
    %c0_i32_1 = arith.constant 0 : i32
    return %c0_i32, %c0_i32_0 : i32, i32
  }
  func.func @transform_7(%arg0: i32, %arg1: i32) -> (i32, i32, i32, i32) {
    %c0_i32 = arith.constant 0 : i32
    %c0_i32_0 = arith.constant 0 : i32
    %c0_i32_1 = arith.constant 0 : i32
    return %arg0, %c0_i32, %c0_i32_0, %arg1 : i32, i32, i32, i32
  }
}

module attributes {stable_mosaic.version = 11 : i64} {
  func.func @kernel(%arg0: i32, %arg1: i32, %arg2: memref<1x2x16x16xbf16, #tpu.memory_space<vmem>>, %arg3: memref<4x2xf32, #tpu.memory_space<smem>>, %arg4: memref<4x2xf32, #tpu.memory_space<smem>>, %arg5: memref<16x128xbf16, #tpu.memory_space<vmem>>, %arg6: memref<16x128xbf16, #tpu.memory_space<vmem>>, %arg7: memref<128x16xbf16, #tpu.memory_space<vmem>>, %arg8: memref<128x16xbf16, #tpu.memory_space<vmem>>, %arg9: memref<1x2x16x16xf32, #tpu.memory_space<vmem>>) attributes {dimension_semantics = [#tpu.dimension_semantics<parallel>, #tpu.dimension_semantics<parallel>], iteration_bounds = array<i64: 2, 1>, scalar_prefetch = 0 : i64, scratch_operands = 0 : i64, tpu.core_type = #tpu.core_type<tc>, window_params = [{transform_indices = @transform_0, window_bounds = array<i64: 1, 2, 16, 16>}, {transform_indices = @transform_1, window_bounds = array<i64: 4, 2>}, {transform_indices = @transform_2, window_bounds = array<i64: 4, 2>}, {pipeline_mode = #tpu.pipeline_mode<synchronous>, transform_indices = @transform_3, window_bounds = array<i64: 16, 128>}, {pipeline_mode = #tpu.pipeline_mode<synchronous>, transform_indices = @transform_4, window_bounds = array<i64: 16, 128>}, {pipeline_mode = #tpu.pipeline_mode<synchronous>, transform_indices = @transform_5, window_bounds = array<i64: 128, 16>}, {pipeline_mode = #tpu.pipeline_mode<synchronous>, transform_indices = @transform_6, window_bounds = array<i64: 128, 16>}, {transform_indices = @transform_7, window_bounds = array<i64: 1, 2, 16, 16>}]} {
    %c0 = arith.constant 0 : index
    %c0_0 = arith.constant 0 : index
    %0 = vector.load %arg5[%c0, %c0_0] : memref<16x128xbf16, #tpu.memory_space<vmem>>, vector<16x128xbf16>
    %c0_1 = arith.constant 0 : index
    %c0_2 = arith.constant 0 : index
    %1 = vector.load %arg6[%c0_1, %c0_2] : memref<16x128xbf16, #tpu.memory_space<vmem>>, vector<16x128xbf16>
    %c0_3 = arith.constant 0 : index
    %c0_4 = arith.constant 0 : index
    %2 = vector.load %arg7[%c0_3, %c0_4] : memref<128x16xbf16, #tpu.memory_space<vmem>>, vector<128x16xbf16>
    %c0_5 = arith.constant 0 : index
    %c0_6 = arith.constant 0 : index
    %3 = vector.load %arg8[%c0_5, %c0_6] : memref<128x16xbf16, #tpu.memory_space<vmem>>, vector<128x16xbf16>
    %c0_7 = arith.constant 0 : index
    %c0_8 = arith.constant 0 : index
    %c0_9 = arith.constant 0 : index
    %c0_10 = arith.constant 0 : index
    %4 = vector.load %arg2[%c0_7, %c0_8, %c0_9, %c0_10] : memref<1x2x16x16xbf16, #tpu.memory_space<vmem>>, vector<1x1x16x16xbf16>
    %5 = vector.shape_cast %4 : vector<1x1x16x16xbf16> to vector<16x16xbf16>
    %c0_11 = arith.constant 0 : index
    %c1 = arith.constant 1 : index
    %c0_12 = arith.constant 0 : index
    %c0_13 = arith.constant 0 : index
    %6 = vector.load %arg2[%c0_11, %c1, %c0_12, %c0_13] : memref<1x2x16x16xbf16, #tpu.memory_space<vmem>>, vector<1x1x16x16xbf16>
    %7 = vector.shape_cast %6 : vector<1x1x16x16xbf16> to vector<16x16xbf16>
    %c0_14 = arith.constant 0 : index
    %c0_15 = arith.constant 0 : index
    %8 = memref.load %arg3[%c0_14, %c0_15] : memref<4x2xf32, #tpu.memory_space<smem>>
    %9 = arith.extf %5 : vector<16x16xbf16> to vector<16x16xf32>
    %10 = vector.broadcast %8 : f32 to vector<16x16xf32>
    %11 = arith.mulf %10, %9 : vector<16x16xf32>
    %c0_16 = arith.constant 0 : index
    %c1_17 = arith.constant 1 : index
    %12 = memref.load %arg3[%c0_16, %c1_17] : memref<4x2xf32, #tpu.memory_space<smem>>
    %13 = arith.extf %7 : vector<16x16xbf16> to vector<16x16xf32>
    %14 = vector.broadcast %12 : f32 to vector<16x16xf32>
    %15 = arith.mulf %14, %13 : vector<16x16xf32>
    %16 = arith.addf %11, %15 : vector<16x16xf32>
    %17 = arith.truncf %16 : vector<16x16xf32> to vector<16x16xbf16>
    %c1_18 = arith.constant 1 : index
    %c0_19 = arith.constant 0 : index
    %18 = memref.load %arg3[%c1_18, %c0_19] : memref<4x2xf32, #tpu.memory_space<smem>>
    %19 = arith.extf %5 : vector<16x16xbf16> to vector<16x16xf32>
    %20 = vector.broadcast %18 : f32 to vector<16x16xf32>
    %21 = arith.mulf %20, %19 : vector<16x16xf32>
    %c1_20 = arith.constant 1 : index
    %c1_21 = arith.constant 1 : index
    %22 = memref.load %arg3[%c1_20, %c1_21] : memref<4x2xf32, #tpu.memory_space<smem>>
    %23 = arith.extf %7 : vector<16x16xbf16> to vector<16x16xf32>
    %24 = vector.broadcast %22 : f32 to vector<16x16xf32>
    %25 = arith.mulf %24, %23 : vector<16x16xf32>
    %26 = arith.addf %21, %25 : vector<16x16xf32>
    %27 = arith.truncf %26 : vector<16x16xf32> to vector<16x16xbf16>
    %c2 = arith.constant 2 : index
    %c0_22 = arith.constant 0 : index
    %28 = memref.load %arg3[%c2, %c0_22] : memref<4x2xf32, #tpu.memory_space<smem>>
    %29 = arith.extf %5 : vector<16x16xbf16> to vector<16x16xf32>
    %30 = vector.broadcast %28 : f32 to vector<16x16xf32>
    %31 = arith.mulf %30, %29 : vector<16x16xf32>
    %c2_23 = arith.constant 2 : index
    %c1_24 = arith.constant 1 : index
    %32 = memref.load %arg3[%c2_23, %c1_24] : memref<4x2xf32, #tpu.memory_space<smem>>
    %33 = arith.extf %7 : vector<16x16xbf16> to vector<16x16xf32>
    %34 = vector.broadcast %32 : f32 to vector<16x16xf32>
    %35 = arith.mulf %34, %33 : vector<16x16xf32>
    %36 = arith.addf %31, %35 : vector<16x16xf32>
    %37 = arith.truncf %36 : vector<16x16xf32> to vector<16x16xbf16>
    %c3 = arith.constant 3 : index
    %c0_25 = arith.constant 0 : index
    %38 = memref.load %arg3[%c3, %c0_25] : memref<4x2xf32, #tpu.memory_space<smem>>
    %39 = arith.extf %5 : vector<16x16xbf16> to vector<16x16xf32>
    %40 = vector.broadcast %38 : f32 to vector<16x16xf32>
    %41 = arith.mulf %40, %39 : vector<16x16xf32>
    %c3_26 = arith.constant 3 : index
    %c1_27 = arith.constant 1 : index
    %42 = memref.load %arg3[%c3_26, %c1_27] : memref<4x2xf32, #tpu.memory_space<smem>>
    %43 = arith.extf %7 : vector<16x16xbf16> to vector<16x16xf32>
    %44 = vector.broadcast %42 : f32 to vector<16x16xf32>
    %45 = arith.mulf %44, %43 : vector<16x16xf32>
    %46 = arith.addf %41, %45 : vector<16x16xf32>
    %47 = arith.truncf %46 : vector<16x16xf32> to vector<16x16xbf16>
    %48 = tpu.concatenate %17, %27, %37, %47 in 0 : vector<16x16xbf16>, vector<16x16xbf16>, vector<16x16xbf16>, vector<16x16xbf16> -> vector<64x16xbf16>
    %c0_28 = arith.constant 0 : index
    %c0_29 = arith.constant 0 : index
    %49 = memref.load %arg4[%c0_28, %c0_29] : memref<4x2xf32, #tpu.memory_space<smem>>
    %50 = arith.extf %5 : vector<16x16xbf16> to vector<16x16xf32>
    %51 = vector.broadcast %49 : f32 to vector<16x16xf32>
    %52 = arith.mulf %51, %50 : vector<16x16xf32>
    %c0_30 = arith.constant 0 : index
    %c1_31 = arith.constant 1 : index
    %53 = memref.load %arg4[%c0_30, %c1_31] : memref<4x2xf32, #tpu.memory_space<smem>>
    %54 = arith.extf %7 : vector<16x16xbf16> to vector<16x16xf32>
    %55 = vector.broadcast %53 : f32 to vector<16x16xf32>
    %56 = arith.mulf %55, %54 : vector<16x16xf32>
    %57 = arith.addf %52, %56 : vector<16x16xf32>
    %58 = arith.truncf %57 : vector<16x16xf32> to vector<16x16xbf16>
    %c1_32 = arith.constant 1 : index
    %c0_33 = arith.constant 0 : index
    %59 = memref.load %arg4[%c1_32, %c0_33] : memref<4x2xf32, #tpu.memory_space<smem>>
    %60 = arith.extf %5 : vector<16x16xbf16> to vector<16x16xf32>
    %61 = vector.broadcast %59 : f32 to vector<16x16xf32>
    %62 = arith.mulf %61, %60 : vector<16x16xf32>
    %c1_34 = arith.constant 1 : index
    %c1_35 = arith.constant 1 : index
    %63 = memref.load %arg4[%c1_34, %c1_35] : memref<4x2xf32, #tpu.memory_space<smem>>
    %64 = arith.extf %7 : vector<16x16xbf16> to vector<16x16xf32>
    %65 = vector.broadcast %63 : f32 to vector<16x16xf32>
    %66 = arith.mulf %65, %64 : vector<16x16xf32>
    %67 = arith.addf %62, %66 : vector<16x16xf32>
    %68 = arith.truncf %67 : vector<16x16xf32> to vector<16x16xbf16>
    %c2_36 = arith.constant 2 : index
    %c0_37 = arith.constant 0 : index
    %69 = memref.load %arg4[%c2_36, %c0_37] : memref<4x2xf32, #tpu.memory_space<smem>>
    %70 = arith.extf %5 : vector<16x16xbf16> to vector<16x16xf32>
    %71 = vector.broadcast %69 : f32 to vector<16x16xf32>
    %72 = arith.mulf %71, %70 : vector<16x16xf32>
    %c2_38 = arith.constant 2 : index
    %c1_39 = arith.constant 1 : index
    %73 = memref.load %arg4[%c2_38, %c1_39] : memref<4x2xf32, #tpu.memory_space<smem>>
    %74 = arith.extf %7 : vector<16x16xbf16> to vector<16x16xf32>
    %75 = vector.broadcast %73 : f32 to vector<16x16xf32>
    %76 = arith.mulf %75, %74 : vector<16x16xf32>
    %77 = arith.addf %72, %76 : vector<16x16xf32>
    %78 = arith.truncf %77 : vector<16x16xf32> to vector<16x16xbf16>
    %c3_40 = arith.constant 3 : index
    %c0_41 = arith.constant 0 : index
    %79 = memref.load %arg4[%c3_40, %c0_41] : memref<4x2xf32, #tpu.memory_space<smem>>
    %80 = arith.extf %5 : vector<16x16xbf16> to vector<16x16xf32>
    %81 = vector.broadcast %79 : f32 to vector<16x16xf32>
    %82 = arith.mulf %81, %80 : vector<16x16xf32>
    %c3_42 = arith.constant 3 : index
    %c1_43 = arith.constant 1 : index
    %83 = memref.load %arg4[%c3_42, %c1_43] : memref<4x2xf32, #tpu.memory_space<smem>>
    %84 = arith.extf %7 : vector<16x16xbf16> to vector<16x16xf32>
    %85 = vector.broadcast %83 : f32 to vector<16x16xf32>
    %86 = arith.mulf %85, %84 : vector<16x16xf32>
    %87 = arith.addf %82, %86 : vector<16x16xf32>
    %88 = arith.truncf %87 : vector<16x16xf32> to vector<16x16xbf16>
    %89 = tpu.concatenate %58, %68, %78, %88 in 0 : vector<16x16xbf16>, vector<16x16xbf16>, vector<16x16xbf16>, vector<16x16xbf16> -> vector<64x16xbf16>
    %cst = arith.constant dense<0.000000e+00> : vector<64x128xf32>
    %90 = tpu.matmul %48, %0, %cst {dimension_numbers = #tpu.dot_dimension_numbers<[1], [0], [0], [1], [0, 0, 1, 1], [], []>} : vector<64x16xbf16>, vector<16x128xbf16>, vector<64x128xf32> -> vector<64x128xf32>
    %cst_44 = arith.constant dense<0.000000e+00> : vector<64x128xf32>
    %91 = tpu.matmul %89, %1, %cst_44 {dimension_numbers = #tpu.dot_dimension_numbers<[1], [0], [0], [1], [0, 0, 1, 1], [], []>} : vector<64x16xbf16>, vector<16x128xbf16>, vector<64x128xf32> -> vector<64x128xf32>
    %92 = arith.subf %90, %91 : vector<64x128xf32>
    %cst_45 = arith.constant 0.000000e+00 : f32
    %93 = vector.broadcast %cst_45 : f32 to vector<64x128xf32>
    %94 = arith.cmpf oge, %92, %93 : vector<64x128xf32>
    %cst_46 = arith.constant 5.000000e-02 : f32
    %95 = vector.broadcast %cst_46 : f32 to vector<64x128xf32>
    %96 = arith.mulf %95, %92 : vector<64x128xf32>
    %97 = arith.select %94, %92, %96 : vector<64x128xi1>, vector<64x128xf32>
    %98 = arith.truncf %97 : vector<64x128xf32> to vector<64x128xbf16>
    %99 = vector.extract_strided_slice %98 {offsets = [0, 0], sizes = [32, 128], strides = [1, 1]} : vector<64x128xbf16> to vector<32x128xbf16>
    %100 = vector.extract_strided_slice %98 {offsets = [32, 0], sizes = [32, 128], strides = [1, 1]} : vector<64x128xbf16> to vector<32x128xbf16>
    %cst_47 = arith.constant dense<0.000000e+00> : vector<32x16xf32>
    %101 = tpu.matmul %99, %2, %cst_47 {dimension_numbers = #tpu.dot_dimension_numbers<[1], [0], [0], [1], [0, 0, 1, 1], [], []>} : vector<32x128xbf16>, vector<128x16xbf16>, vector<32x16xf32> -> vector<32x16xf32>
    %cst_48 = arith.constant dense<0.000000e+00> : vector<32x16xf32>
    %102 = tpu.matmul %100, %3, %cst_48 {dimension_numbers = #tpu.dot_dimension_numbers<[1], [0], [0], [1], [0, 0, 1, 1], [], []>} : vector<32x128xbf16>, vector<128x16xbf16>, vector<32x16xf32> -> vector<32x16xf32>
    %103 = arith.addf %101, %102 : vector<32x16xf32>
    %104 = vector.shape_cast %103 : vector<32x16xf32> to vector<2x16x16xf32>
    %c0_49 = arith.constant 0 : index
    %c0_50 = arith.constant 0 : index
    %c0_51 = arith.constant 0 : index
    %c0_52 = arith.constant 0 : index
    %105 = vector.load %arg9[%c0_49, %c0_50, %c0_51, %c0_52] : memref<1x2x16x16xf32, #tpu.memory_space<vmem>>, vector<1x2x16x16xf32>
    %106 = vector.shape_cast %105 : vector<1x2x16x16xf32> to vector<2x16x16xf32>
    %107 = vector.shape_cast %104 : vector<2x16x16xf32> to vector<1x2x16x16xf32>
    tpu.vector_store %arg9[%c0_49, %c0_50, %c0_51, %c0_52], %107 {strides = array<i32>} : memref<1x2x16x16xf32, #tpu.memory_space<vmem>>, vector<1x2x16x16xf32>,
    return
  }
  func.func @transform_0(%arg0: i32, %arg1: i32) -> (i32, i32, i32, i32) {
    %c0_i32 = arith.constant 0 : i32
    %c0_i32_0 = arith.constant 0 : i32
    %c0_i32_1 = arith.constant 0 : i32
    return %arg0, %c0_i32, %arg1, %c0_i32_0 : i32, i32, i32, i32
  }
  func.func @transform_1(%arg0: i32, %arg1: i32) -> (i32, i32) {
    %c0_i32 = arith.constant 0 : i32
    %c0_i32_0 = arith.constant 0 : i32
    %c0_i32_1 = arith.constant 0 : i32
    return %c0_i32, %c0_i32_0 : i32, i32
  }
  func.func @transform_2(%arg0: i32, %arg1: i32) -> (i32, i32) {
    %c0_i32 = arith.constant 0 : i32
    %c0_i32_0 = arith.constant 0 : i32
    %c0_i32_1 = arith.constant 0 : i32
    return %c0_i32, %c0_i32_0 : i32, i32
  }
  func.func @transform_3(%arg0: i32, %arg1: i32) -> (i32, i32) {
    %c0_i32 = arith.constant 0 : i32
    %c0_i32_0 = arith.constant 0 : i32
    %c0_i32_1 = arith.constant 0 : i32
    return %c0_i32, %c0_i32_0 : i32, i32
  }
  func.func @transform_4(%arg0: i32, %arg1: i32) -> (i32, i32) {
    %c0_i32 = arith.constant 0 : i32
    %c0_i32_0 = arith.constant 0 : i32
    %c0_i32_1 = arith.constant 0 : i32
    return %c0_i32, %c0_i32_0 : i32, i32
  }
  func.func @transform_5(%arg0: i32, %arg1: i32) -> (i32, i32) {
    %c0_i32 = arith.constant 0 : i32
    %c0_i32_0 = arith.constant 0 : i32
    %c0_i32_1 = arith.constant 0 : i32
    return %c0_i32, %c0_i32_0 : i32, i32
  }
  func.func @transform_6(%arg0: i32, %arg1: i32) -> (i32, i32) {
    %c0_i32 = arith.constant 0 : i32
    %c0_i32_0 = arith.constant 0 : i32
    %c0_i32_1 = arith.constant 0 : i32
    return %c0_i32, %c0_i32_0 : i32, i32
  }
  func.func @transform_7(%arg0: i32, %arg1: i32) -> (i32, i32, i32, i32) {
    %c0_i32 = arith.constant 0 : i32
    %c0_i32_0 = arith.constant 0 : i32
    %c0_i32_1 = arith.constant 0 : i32
    return %arg0, %c0_i32, %arg1, %c0_i32_0 : i32, i32, i32, i32
  }
}

</mosaic_0001>

<bundles_post_ra>
// kernel: dual_fourier_unit.3
= control target key start
LH: loop header
LB: loop body
LE: loop exit
PB: predicated region body
PF: predicated region fallthrough
CT: control target
= control target key end

     0   :  { %12 = vsyncpa [#allocation3], 0  ;;  %s2336_s0 = inlined_call_operand.vmem [shape: bf16[2,2,16,16], index: 0, kind: input, shape index: {}]   ;;  %s2337_s1 = inlined_call_operand.vmem [shape: f32[4,2], index: 1, kind: input, shape index: {}]   ;;  %s2338_s2 = inlined_call_operand.vmem [shape: f32[4,2], index: 2, kind: input, shape index: {}]   ;;  %s2339_s3 = inlined_call_operand.vmem [shape: bf16[128,16], index: 3, kind: input, shape index: {}]   ;;  %s2340_s4 = inlined_call_operand.vmem [shape: bf16[128,16], index: 4, kind: input, shape index: {}]   ;;  %s2341_s5 = inlined_call_operand.vmem [shape: bf16[16,128], index: 5, kind: input, shape index: {}]   ;;  %s2342_s6 = inlined_call_operand.vmem [shape: bf16[16,128], index: 6, kind: input, shape index: {}]   ;;  %s2343_s7 = inlined_call_operand.vmem [shape: f32[2,2,16,16], index: 7, kind: output, shape index: {}]  }
   0x1   :  { %13 = vsyncpa [#allocation5], 0  ;;  %s1806_s24 = smov 0   ;;  %s1808_s25 = smov 0  }
   0x2   :  { %s1810_s26 = smov 0  }
   0x3 LB: > { %s1459_s27 = sadd.s32 4294967295, %s1762_s26   ;;  %s31_s28 = sadd.s32 1, %s1758_s25  ;;  %s1762_s26 = sphi %s1810_s26, %s19_s26   ;;  %s1758_s25 = sphi %s1808_s25, %s2349_s25   ;;  %s1754_s24 = sphi %s1806_s24, %s2348_s24  }
   0x4   : > { %p33_p0 = scmp.ge.s32.totalorder %s31_s28, 2  ;;  %p1461_p1 = scmp.ge.s32.totalorder %s1762_s26, 1 }
   0x5   : > { %p218_p2 = scmp.lt.s32.totalorder %s1762_s26, 3  ;;  %p1827_p4 = scmp.eq.s32.totalorder %s1459_s27, 0 }
   0x6   : > { %s2351_s28 = smov (%p33_p0, %s31_s28), 0  ;;  %s230_s9 = sshll.u32 %s2337_s1, 4  ;;  %s231_s9 = int_to_ptr.vmem [resolvable:$true] %s230_s9 }
   0x7   : > { %p219_p3 = pnand %p1461_p1, %p218_p2  ;;  %s240_s12 = sshll.u32 %s2338_s2, 4  ;;  %s241_s12 = int_to_ptr.vmem [resolvable:$true] %s240_s12 }
   0x8   : > { %s1764_s13 = smov [#allocation2]   ;;  %s1765_s14 = smov [#allocation4]  }
   0x9   : > { %p1665_p5 = pneg %p219_p3 }
   0xa   : > { %276 = sbr.rel (%p219_p3) target bundleno = 605 (0x25d), region = 48 }
   0xb   : > { %p1666_p6 = pnand %p1827_p4, %p1665_p5 }
   0xd   : > { %1668 = dma.vmem_to_smem (!%p1666_p6), %s231_s9, 64, %s1764_s13, [#allocation3]  }
   0xe   : > { %1671 = dma.vmem_to_smem (!%p1666_p6), %s241_s12, 64, %s1765_s14, [#allocation5]  }
   0xf   : > { %1745 = dma.done.wait (%p1827_p4), [#allocation3], 64  }
  0x10   : > { %1747 = vsyncadd (%p1827_p4), [#allocation3], 4294967232 }
  0x11   : > { %1749 = dma.done.wait (%p1827_p4), [#allocation5], 64  }
  0x12   : > { %1751 = vsyncadd (%p1827_p4), [#allocation5], 4294967232 }
  0x13   : > { %288 = sfence }
  0x14   : > { %p321_p7 = scmp.lt.s32.totalorder %s1754_s24, 1  ;;  %s379_s15 = sld [smem:[#allocation2]]  ;;  %vm445_vm0 = vcmask 130048   ;;  %v1880_v30 = vld [vmem:[%s2339_s3] sm:$0xff]  ;;  %v1903_v44 = vld [vmem:[%s2339_s3 + $0x8] sm:$0xff]  ;;  %v1921_v46 = vld [vmem:[%s2339_s3 + $0x10] sm:$0xff] }
  0x15   : > { %s1474_s16 = sld [smem:[#allocation2 + $0x1]]  ;;  %v1890_v39 = vld [vmem:[%s2340_s4] sm:$0xff]  ;;  %v1908_v45 = vld [vmem:[%s2340_s4 + $0x8] sm:$0xff]  ;;  %v1926_v47 = vld [vmem:[%s2340_s4 + $0x10] sm:$0xff] }
  0x16   : > { %s2353_s24 = smov (!%p321_p7, %s1754_s24), 1  ;;  %s394_s17 = sld [smem:[#allocation4]]  ;;  %v1939_v48 = vld [vmem:[%s2339_s3 + $0x18] sm:$0xff]  ;;  %v1957_v50 = vld [vmem:[%s2339_s3 + $0x20] sm:$0xff] }
  0x17   : > { %s1628_s18 = sshll.u32 %s2353_s24, 4  ;;  %s1475_s19 = sld [smem:[#allocation4 + $0x1]]  ;;  %v1944_v49 = vld [vmem:[%s2340_s4 + $0x18] sm:$0xff]  ;;  %v1962_v51 = vld [vmem:[%s2340_s4 + $0x20] sm:$0xff] }
  0x18   : > { %s328_s22 = scalar_lea.vmem %s2336_s0, %s1628_s18  ;;  %s1556_s23 = sld [smem:[#allocation2 + $0x80]] }
  0x19   : > { %v1649_v0 = vld [vmem:[%s328_s22] sm:$0xff]   ;;  %v1656_v1 = vld [vmem:[%s328_s22 + $0x8] sm:$0xff]   ;;  %s1557_s27 = sld [smem:[#allocation2 + $0x81]] }
  0x1a   : > { %v382_v2 = vstv %s379_s15  ;;  %v1855_v3 = vunpack.c.l.bf16 %v1649_v0  ;;  %v1857_v4 = vunpack.c.h.bf16 %v1649_v0  ;;  %v1859_v5 = vunpack.c.l.bf16 %v1656_v1  ;;  %s1558_s29 = sld [smem:[#allocation4 + $0x80]] }
  0x1b   : > { %v1861_v6 = vunpack.c.h.bf16 %v1656_v1  ;;  %v388_v7 = vstv %s1474_s16  ;;  %s1863_s30 = sld [smem:[#allocation4 + $0x81]] }
  0x1c   : > { %v383_v8 = vmul.f32 %v1855_v3, %v382_v2  ;;  %v384_v9 = vmul.f32 %v1857_v4, %v382_v2  ;;  %v389_v10 = vmul.f32 %v1859_v5, %v388_v7  ;;  %v395_v12 = vstv %s394_s17  ;;  %s1597_s8 = sld [smem:[#allocation2 + $0x181]] }
  0x1d   : > { %v390_v11 = vmul.f32 %v1861_v6, %v388_v7  ;;  %v399_v13 = vstv %s1475_s19  ;;  %v396_v16 = vmul.f32 %v1855_v3, %v395_v12  ;;  %v397_v17 = vmul.f32 %v1857_v4, %v395_v12  ;;  %s1598_s9 = sld [smem:[#allocation4 + $0x180]]  ;;  %v1989_v12 = vld [vmem:[%s2339_s3 + $0x28] sm:$0xff] }
  0x1e   : > { %v391_v14 = vadd.f32 %v389_v10, %v383_v8  ;;  %v400_v18 = vmul.f32 %v1859_v5, %v399_v13  ;;  %v401_v19 = vmul.f32 %v1861_v6, %v399_v13  ;;  %v705_v20 = vstv %s1556_s23  ;;  %s1599_s12 = sld [smem:[#allocation4 + $0x181]] }
  0x1f   : > { %v392_v15 = vadd.f32 %v390_v11, %v384_v9  ;;  %v709_v21 = vstv %s1557_s27  ;;  %v706_v23 = vmul.f32 %v1855_v3, %v705_v20  ;;  %v707_v24 = vmul.f32 %v1857_v4, %v705_v20  ;;  %s1576_s13 = sld [smem:[#allocation2 + $0x100]] }
  0x20   : > { %v710_v25 = vmul.f32 %v1859_v5, %v709_v21  ;;  %v402_v26 = vadd.f32 %v400_v18, %v396_v16  ;;  %v403_v27 = vadd.f32 %v401_v19, %v397_v17  ;;  %v711_v28 = vmul.f32 %v1861_v6, %v709_v21  ;;  %s1577_s14 = sld [smem:[#allocation2 + $0x101]] }
  0x21   : > { %v393_v22 = vpack.c.bf16 %v392_v15, %v391_v14  ;;  %v716_v29 = vstv %s1558_s29  ;;  %v720_v34 = vstv %s1863_s30  ;;  %s1596_s30 = sld [smem:[#allocation2 + $0x180]] }
  0x22   : > { %v712_v31 = vadd.f32 %v710_v25, %v706_v23  ;;  %v717_v32 = vmul.f32 %v1855_v3, %v716_v29  ;;  %v718_v33 = vmul.f32 %v1857_v4, %v716_v29  ;;  %v404_v35 = vpack.c.bf16 %v403_v27, %v402_v26  ;;  %s1968_s15 = sld [smem:[#allocation4 + $0x100]]  ;;  %v2002_v25 = vld [vmem:[%s2340_s4 + $0x28] sm:$0xff]  ;;  %v2038_v29 = vld [vmem:[%s2340_s4 + $0x38] sm:$0xff] }
  0x23   : > { %477 = vmatpush.bf16.msra.mxu0 %v393_v22  ;;  %v713_v36 = vadd.f32 %v711_v28, %v707_v24  ;;  %v721_v37 = vmul.f32 %v1859_v5, %v720_v34  ;;  %v722_v38 = vmul.f32 %v1861_v6, %v720_v34  ;;  %s1972_s16 = sld [smem:[#allocation4 + $0x101]]  ;;  %v1093_v53 = vstv %s1597_s8  ;;  %v2033_v28 = vld [vmem:[%s2339_s3 + $0x38] sm:$0xff] }
  0x24   : > { %590 = vmatpush.bf16.msra.mxu1 %v404_v35  ;;  %v1100_v54 = vstv %s1598_s9  ;;  %v1104_v55 = vstv %s1599_s12  ;;  %v1094_v58 = vmul.f32 %v1859_v5, %v1093_v53  ;;  %v1095_v59 = vmul.f32 %v1861_v6, %v1093_v53 }
  0x25   : > { %v714_v40 = vpack.c.bf16 %v713_v36, %v712_v31  ;;  %v723_v41 = vadd.f32 %v721_v37, %v717_v32  ;;  %v724_v42 = vadd.f32 %v722_v38, %v718_v33  ;;  %v1101_v60 = vmul.f32 %v1855_v3, %v1100_v54 }
  0x26   : > { %1508 = vmatmul.msk.bf16.vlgmr.msra.gmra.mxu0 %vm445_vm0, %v1880_v30  ;;  %v1102_v61 = vmul.f32 %v1857_v4, %v1100_v54  ;;  %v1105_v62 = vmul.f32 %v1859_v5, %v1104_v55  ;;  %v1106_v63 = vmul.f32 %v1861_v6, %v1104_v55  ;;  %v897_v2 = vstv %s1576_s13 }
  0x27   : > { %733 = vmatpush.bf16.msra.mxu2 %v714_v40  ;;  %v725_v43 = vpack.c.bf16 %v724_v42, %v723_v41  ;;  %1548 = vmatmul.msk.bf16.vlgmr.msra.gmra.mxu1 %vm445_vm0, %v1890_v39  ;;  %v1089_v52 = vstv %s1596_s30  ;;  %v901_v7 = vstv %s1577_s14  ;;  %v898_v10 = vmul.f32 %v1855_v3, %v897_v2  ;;  %s1629_s14 = sshll.u32 %s2353_s24, 5 }
  0x28   : > { %v1090_v56 = vmul.f32 %v1855_v3, %v1089_v52  ;;  %v1091_v57 = vmul.f32 %v1857_v4, %v1089_v52  ;;  %v1107_v8 = vadd.f32 %v1105_v62, %v1101_v60  ;;  %v1108_v9 = vadd.f32 %v1106_v63, %v1102_v61  ;;  %s336_s17 = scalar_lea.vmem %s2343_s7, %s1629_s14 }
  0x29   : > { %782 = vmatpush.bf16.msra.mxu3 %v725_v43  ;;  %v899_v11 = vmul.f32 %v1857_v4, %v897_v2  ;;  %v902_v14 = vmul.f32 %v1859_v5, %v901_v7  ;;  %v903_v15 = vmul.f32 %v1861_v6, %v901_v7  ;;  %v908_v16 = vstv %s1968_s15 }
  0x2a   : > { %1560 = vmatmul.msk.bf16.vlgmr.msra.gmra.mxu2 %vm445_vm0, %v1880_v30  ;;  %v1096_v0 = vadd.f32 %v1094_v58, %v1090_v56  ;;  %v1097_v1 = vadd.f32 %v1095_v59, %v1091_v57  ;;  %v1109_v17 = vpack.c.bf16 %v1108_v9, %v1107_v8  ;;  %v909_v18 = vmul.f32 %v1855_v3, %v908_v16 }
  0x2b   : > { %v910_v19 = vmul.f32 %v1857_v4, %v908_v16  ;;  %v912_v20 = vstv %s1972_s16  ;;  %v904_v21 = vadd.f32 %v902_v14, %v898_v10  ;;  %v905_v22 = vadd.f32 %v903_v15, %v899_v11 }
  0x2c   : > { %1568 = vmatmul.msk.bf16.vlgmr.msra.gmra.mxu3 %vm445_vm0, %v1890_v39  ;;  %v1098_v13 = vpack.c.bf16 %v1097_v1, %v1096_v0  ;;  %v913_v23 = vmul.f32 %v1859_v5, %v912_v20  ;;  %v914_v24 = vmul.f32 %v1861_v6, %v912_v20  ;;  %v2015_v5 = vld [vmem:[%s2339_s3 + $0x30] sm:$0xff] }
  0x2d   : > { %1166 = vmatpush.bf16.msrb.mxu3 %v1109_v17  ;;  %v906_v3 = vpack.c.bf16 %v905_v22, %v904_v21  ;;  %v2020_v6 = vld [vmem:[%s2340_s4 + $0x30] sm:$0xff] }
  0x2e   : > { %1117 = vmatpush.bf16.msrb.mxu2 %v1098_v13  ;;  %v915_v26 = vadd.f32 %v913_v23, %v909_v18  ;;  %v916_v4 = vadd.f32 %v914_v24, %v910_v19 }
  0x2f   : > { %925 = vmatpush.bf16.msrb.mxu0 %v906_v3 }
  0x30   : > { %v917_v27 = vpack.c.bf16 %v916_v4, %v915_v26 }
  0x32   : > { %974 = vmatpush.bf16.msrb.mxu1 %v917_v27 }
  0x36   : > { %1509 = vmatmul.msk.bf16.gmra.mxu0 %vm445_vm0, %v1903_v44 }
  0x37   : > { %1549 = vmatmul.msk.bf16.gmra.mxu1 %vm445_vm0, %v1908_v45 }
  0x3a   : > { %1561 = vmatmul.msk.bf16.gmra.mxu2 %vm445_vm0, %v1903_v44 }
  0x3c   : > { %1569 = vmatmul.msk.bf16.gmra.mxu3 %vm445_vm0, %v1908_v45 }
  0x46   : > { %1510 = vmatmul.msk.bf16.gmra.mxu0 %vm445_vm0, %v1921_v46 }
  0x47   : > { %1550 = vmatmul.msk.bf16.gmra.mxu1 %vm445_vm0, %v1926_v47 }
  0x4a   : > { %1562 = vmatmul.msk.bf16.gmra.mxu2 %vm445_vm0, %v1921_v46 }
  0x4c   : > { %1570 = vmatmul.msk.bf16.gmra.mxu3 %vm445_vm0, %v1926_v47 }
  0x56   : > { %1511 = vmatmul.msk.bf16.gmra.mxu0 %vm445_vm0, %v1939_v48 }
  0x57   : > { %1551 = vmatmul.msk.bf16.gmra.mxu1 %vm445_vm0, %v1944_v49 }
  0x5a   : > { %1563 = vmatmul.msk.bf16.gmra.mxu2 %vm445_vm0, %v1939_v48 }
  0x5c   : > { %1571 = vmatmul.msk.bf16.gmra.mxu3 %vm445_vm0, %v1944_v49 }
  0x66   : > { %1512 = vmatmul.msk.bf16.gmra.mxu0 %vm445_vm0, %v1957_v50 }
  0x67   : > { %1552 = vmatmul.msk.bf16.gmra.mxu1 %vm445_vm0, %v1962_v51 }
  0x6a   : > { %1564 = vmatmul.msk.bf16.gmra.mxu2 %vm445_vm0, %v1957_v50 }
  0x6c   : > { %1572 = vmatmul.msk.bf16.gmra.mxu3 %vm445_vm0, %v1962_v51 }
  0x76   : > { %1513 = vmatmul.msk.bf16.gmra.mxu0 %vm445_vm0, %v1989_v12 }
  0x77   : > { %1553 = vmatmul.msk.bf16.gmra.mxu1 %vm445_vm0, %v2002_v25 }
  0x7a   : > { %1565 = vmatmul.msk.bf16.gmra.mxu2 %vm445_vm0, %v1989_v12 }
  0x7c   : > { %1573 = vmatmul.msk.bf16.gmra.mxu3 %vm445_vm0, %v2002_v25 }
  0x86   : > { %1514 = vmatmul.msk.bf16.gmra.mxu0 %vm445_vm0, %v2015_v5 }
  0x87   : > { %1554 = vmatmul.msk.bf16.gmra.mxu1 %vm445_vm0, %v2020_v6 }
  0x8a   : > { %1566 = vmatmul.msk.bf16.gmra.mxu2 %vm445_vm0, %v2015_v5 }
  0x8c   : > { %1574 = vmatmul.msk.bf16.gmra.mxu3 %vm445_vm0, %v2020_v6 }
  0x96   : > { %1515 = vmatmul.msk.bf16.gmra.mxu0 %vm445_vm0, %v2033_v28 }
  0x97   : > { %1555 = vmatmul.msk.bf16.gmra.mxu1 %vm445_vm0, %v2038_v29 }
  0x9a   : > { %1567 = vmatmul.msk.bf16.gmra.mxu2 %vm445_vm0, %v2033_v28 }
  0x9c   : > { %1575 = vmatmul.msk.bf16.gmra.mxu3 %vm445_vm0, %v2038_v29 }
  0xa3   : > { %v479_v31 = vpop.f32.mrf.mxu0 }
  0xa4   : > { %v592_v32 = vpop.f32.mrf.mxu1 }
  0xa5   : > { %v632_v33 = vsub.f32 %v479_v31, %v592_v32 }
  0xa6   : > { %1580 = vmatmul.msk.bf16.vlgmr.msrb.gmra.mxu0 %vm445_vm0, %v1880_v30 }
  0xa7   : > { %1588 = vmatmul.msk.bf16.vlgmr.msrb.gmra.mxu1 %vm445_vm0, %v1890_v39  ;;  %v664_v35 = vmul.f32 0.05, %v632_v33  ;;  %vm648_vm1 = vcmp.ge.f32.partialorder %v632_v33, 0.0 }
  0xa9   : > { %v2056_v43 = vsel %vm648_vm1, %v632_v33, %v664_v35 }
  0xaa   : > { %1600 = vmatmul.msk.bf16.vlgmr.msrb.gmra.mxu2 %vm445_vm0, %v1880_v30 }
  0xab   : > { %v481_v34 = vpop.f32.mrf.mxu0 }
  0xac   : > { %1608 = vmatmul.msk.bf16.vlgmr.msrb.gmra.mxu3 %vm445_vm0, %v1890_v39  ;;  %v594_v37 = vpop.f32.mrf.mxu1 }
  0xad   : > { %v735_v36 = vpop.f32.mrf.mxu2  ;;  %v633_v38 = vsub.f32 %v481_v34, %v594_v37 }
  0xaf   : > { %v784_v40 = vpop.f32.mrf.mxu3  ;;  %vm649_vm2 = vcmp.ge.f32.partialorder %v633_v38, 0.0  ;;  %v665_v42 = vmul.f32 0.05, %v633_v38 }
  0xb0   : > { %v824_v41 = vsub.f32 %v735_v36, %v784_v40 }
  0xb1   : > { %v2058_v53 = vsel %vm649_vm2, %v633_v38, %v665_v42 }
  0xb2   : > { %v696_v30 = vpack.c.bf16 %v2058_v53, %v2056_v43  ;;  %v856_v57 = vmul.f32 0.05, %v824_v41  ;;  %vm840_vm3 = vcmp.ge.f32.partialorder %v824_v41, 0.0 }
  0xb3   : > { %v484_v52 = vpop.f32.mrf.mxu0 }
  0xb4   : > { %v597_v55 = vpop.f32.mrf.mxu1  ;;  %v2070_v62 = vsel %vm840_vm3, %v824_v41, %v856_v57 }
  0xb5   : > { %v737_v54 = vpop.f32.mrf.mxu2  ;;  %v634_v39 = vsub.f32 %v484_v52, %v597_v55 }
  0xb6   : > { %1581 = vmatmul.msk.bf16.gmra.mxu0 %vm445_vm0, %v1903_v44 }
  0xb7   : > { %v786_v56 = vpop.f32.mrf.mxu3  ;;  %1589 = vmatmul.msk.bf16.gmra.mxu1 %vm445_vm0, %v1908_v45  ;;  %v666_v61 = vmul.f32 0.05, %v634_v39  ;;  %vm650_vm5 = vcmp.ge.f32.partialorder %v634_v39, 0.0 }
  0xb8   : > { %v825_v58 = vsub.f32 %v737_v54, %v786_v56 }
  0xb9   : > { %v2076_v10 = vsel %vm650_vm5, %v634_v39, %v666_v61 }
  0xba   : > { %vm841_vm4 = vcmp.ge.f32.partialorder %v825_v58, 0.0  ;;  %v857_v59 = vmul.f32 0.05, %v825_v58  ;;  %1601 = vmatmul.msk.bf16.gmra.mxu2 %vm445_vm0, %v1903_v44 }
  0xbb   : > { %v486_v60 = vpop.f32.mrf.mxu0 }
  0xbc   : > { %1609 = vmatmul.msk.bf16.gmra.mxu3 %vm445_vm0, %v1908_v45  ;;  %v2072_v63 = vsel %vm841_vm4, %v825_v58, %v857_v59  ;;  %v599_v1 = vpop.f32.mrf.mxu1 }
  0xbd   : > { %v740_v0 = vpop.f32.mrf.mxu2  ;;  %v635_v7 = vsub.f32 %v486_v60, %v599_v1 }
  0xbf   : > { %v789_v8 = vpop.f32.mrf.mxu3  ;;  %vm651_vm6 = vcmp.ge.f32.partialorder %v635_v7, 0.0  ;;  %v667_v44 = vmul.f32 0.05, %v635_v7 }
  0xc0   : > { %v826_v9 = vsub.f32 %v740_v0, %v789_v8 }
  0xc1   : > { %v2078_v13 = vsel %vm651_vm6, %v635_v7, %v667_v44 }
  0xc2   : > { %v697_v45 = vpack.c.bf16 %v2078_v13, %v2076_v10  ;;  %v858_v18 = vmul.f32 0.05, %v826_v9  ;;  %vm842_vm7 = vcmp.ge.f32.partialorder %v826_v9, 0.0 }
  0xc3   : > { %v489_v11 = vpop.f32.mrf.mxu0 }
  0xc4   : > { %v602_v15 = vpop.f32.mrf.mxu1  ;;  %v2090_v23 = vsel %vm842_vm7, %v826_v9, %v858_v18 }
  0xc5   : > { %v742_v14 = vpop.f32.mrf.mxu2  ;;  %v636_v16 = vsub.f32 %v489_v11, %v602_v15 }
  0xc6   : > { %1582 = vmatmul.msk.bf16.gmra.mxu0 %vm445_vm0, %v1921_v46 }
  0xc7   : > { %v791_v17 = vpop.f32.mrf.mxu3  ;;  %1590 = vmatmul.msk.bf16.gmra.mxu1 %vm445_vm0, %v1926_v47  ;;  %v668_v22 = vmul.f32 0.05, %v636_v16  ;;  %vm652_vm9 = vcmp.ge.f32.partialorder %v636_v16, 0.0 }
  0xc8   : > { %v827_v19 = vsub.f32 %v742_v14, %v791_v17 }
  0xc9   : > { %v2096_v33 = vsel %vm652_vm9, %v636_v16, %v668_v22 }
  0xca   : > { %vm843_vm8 = vcmp.ge.f32.partialorder %v827_v19, 0.0  ;;  %v859_v20 = vmul.f32 0.05, %v827_v19  ;;  %1602 = vmatmul.msk.bf16.gmra.mxu2 %vm445_vm0, %v1921_v46 }
  0xcb   : > { %v491_v21 = vpop.f32.mrf.mxu0 }
  0xcc   : > { %1610 = vmatmul.msk.bf16.gmra.mxu3 %vm445_vm0, %v1926_v47  ;;  %v2092_v24 = vsel %vm843_vm8, %v827_v19, %v859_v20  ;;  %v604_v26 = vpop.f32.mrf.mxu1 }
  0xcd   : > { %v745_v3 = vpop.f32.mrf.mxu2  ;;  %v637_v27 = vsub.f32 %v491_v21, %v604_v26 }
  0xcf   : > { %v794_v31 = vpop.f32.mrf.mxu3  ;;  %vm653_vm10 = vcmp.ge.f32.partialorder %v637_v27, 0.0  ;;  %v669_v46 = vmul.f32 0.05, %v637_v27 }
  0xd0   : > { %v828_v32 = vsub.f32 %v745_v3, %v794_v31 }
  0xd1   : > { %v2098_v35 = vsel %vm653_vm10, %v637_v27, %v669_v46 }
  0xd2   : > { %v698_v47 = vpack.c.bf16 %v2098_v35, %v2096_v33  ;;  %v860_v41 = vmul.f32 0.05, %v828_v32  ;;  %vm844_vm11 = vcmp.ge.f32.partialorder %v828_v32, 0.0 }
  0xd3   : > { %v494_v34 = vpop.f32.mrf.mxu0 }
  0xd4   : > { %v607_v37 = vpop.f32.mrf.mxu1  ;;  %v2110_v39 = vsel %vm844_vm11, %v828_v32, %v860_v41 }
  0xd5   : > { %v747_v36 = vpop.f32.mrf.mxu2  ;;  %v638_v38 = vsub.f32 %v494_v34, %v607_v37 }
  0xd6   : > { %1583 = vmatmul.msk.bf16.gmra.mxu0 %vm445_vm0, %v1939_v48 }
  0xd7   : > { %v796_v40 = vpop.f32.mrf.mxu3  ;;  %1591 = vmatmul.msk.bf16.gmra.mxu1 %vm445_vm0, %v1944_v49  ;;  %v670_v55 = vmul.f32 0.05, %v638_v38  ;;  %vm654_vm13 = vcmp.ge.f32.partialorder %v638_v38, 0.0 }
  0xd8   : > { %v829_v42 = vsub.f32 %v747_v36, %v796_v40 }
  0xd9   : > { %v2116_v1 = vsel %vm654_vm13, %v638_v38, %v670_v55 }
  0xda   : > { %vm845_vm12 = vcmp.ge.f32.partialorder %v829_v42, 0.0  ;;  %v861_v52 = vmul.f32 0.05, %v829_v42  ;;  %1603 = vmatmul.msk.bf16.gmra.mxu2 %vm445_vm0, %v1939_v48 }
  0xdb   : > { %v496_v54 = vpop.f32.mrf.mxu0 }
  0xdc   : > { %1611 = vmatmul.msk.bf16.gmra.mxu3 %vm445_vm0, %v1944_v49  ;;  %v2112_v56 = vsel %vm845_vm12, %v829_v42, %v861_v52  ;;  %v609_v58 = vpop.f32.mrf.mxu1 }
  0xdd   : > { %v750_v57 = vpop.f32.mrf.mxu2  ;;  %v890_v59 = vpack.c.bf16 %v2112_v56, %v2110_v39  ;;  %v639_v60 = vsub.f32 %v496_v54, %v609_v58  ;;  %v2346_v39 = vpack.c.bf16 %v2072_v63, %v2070_v62 }
  0xdf   : > { %v799_v61 = vpop.f32.mrf.mxu3  ;;  %vm655_vm14 = vcmp.ge.f32.partialorder %v639_v60, 0.0  ;;  %v671_v48 = vmul.f32 0.05, %v639_v60 }
  0xe0   : > { %v830_v0 = vsub.f32 %v750_v57, %v799_v61 }
  0xe1   : > { %v2118_v8 = vsel %vm655_vm14, %v639_v60, %v671_v48 }
  0xe2   : > { %v699_v49 = vpack.c.bf16 %v2118_v8, %v2116_v1  ;;  %v862_v15 = vmul.f32 0.05, %v830_v0  ;;  %vm846_vm15 = vcmp.ge.f32.partialorder %v830_v0, 0.0 }
  0xe3   : > { %v499_v7 = vpop.f32.mrf.mxu0 }
  0xe4   : > { %v612_v44 = vpop.f32.mrf.mxu1  ;;  %v2132_v19 = vsel %vm846_vm15, %v830_v0, %v862_v15 }
  0xe5   : > { %v752_v9 = vpop.f32.mrf.mxu2  ;;  %v2124_v11 = vsub.f32 %v499_v7, %v612_v44 }
  0xe6   : > { %1584 = vmatmul.msk.bf16.gmra.mxu0 %vm445_vm0, %v1957_v50 }
  0xe7   : > { %v801_v14 = vpop.f32.mrf.mxu3  ;;  %1592 = vmatmul.msk.bf16.gmra.mxu1 %vm445_vm0, %v1962_v51  ;;  %vm656_vm8 = vcmp.ge.f32.partialorder %v2124_v11, 0.0 }
  0xe8   : > { %v831_v16 = vsub.f32 %v752_v9, %v801_v14 }
  0xea   : > { %vm847_vm1 = vcmp.ge.f32.partialorder %v831_v16, 0.0  ;;  %v863_v17 = vmul.f32 0.05, %v831_v16  ;;  %1604 = vmatmul.msk.bf16.gmra.mxu2 %vm445_vm0, %v1957_v50 }
  0xeb   : > { %v501_v18 = vpop.f32.mrf.mxu0 }
  0xec   : > { %1612 = vmatmul.msk.bf16.gmra.mxu3 %vm445_vm0, %v1962_v51  ;;  %v2134_v20 = vsel %vm847_vm1, %v831_v16, %v863_v17  ;;  %v614_v22 = vpop.f32.mrf.mxu1 }
  0xed   : > { %v755_v21 = vpop.f32.mrf.mxu2  ;;  %v891_v3 = vpack.c.bf16 %v2134_v20, %v2132_v19 }
  0xef   : > { %v804_v26 = vpop.f32.mrf.mxu3 }
  0xf0   : > { %v2138_v27 = vsub.f32 %v755_v21, %v804_v26 }
  0xf3   : > { %v504_v31 = vpop.f32.mrf.mxu0 }
  0xf4   : > { %v617_v50 = vpop.f32.mrf.mxu1 }
  0xf5   : > { %v2140_v32 = vpop.f32.mrf.mxu2  ;;  %v642_v14 = vsub.f32 %v504_v31, %v617_v50  ;;  %v672_v31 = vmul.f32 0.05, %v2124_v11 }
  0xf6   : > { %1585 = vmatmul.msk.bf16.gmra.mxu0 %vm445_vm0, %v1989_v12 }
  0xf7   : > { %v2144_v51 = vpop.f32.mrf.mxu3  ;;  %1593 = vmatmul.msk.bf16.gmra.mxu1 %vm445_vm0, %v2002_v25  ;;  %vm658_vm6 = vcmp.ge.f32.partialorder %v642_v14, 0.0 }
  0xfa   : > { %1605 = vmatmul.msk.bf16.gmra.mxu2 %vm445_vm0, %v1989_v12 }
  0xfb   : > { %v506_v46 = vpop.f32.mrf.mxu0 }
  0xfc   : > { %1613 = vmatmul.msk.bf16.gmra.mxu3 %vm445_vm0, %v2002_v25  ;;  %v619_v36 = vpop.f32.mrf.mxu1 }
  0xfd   : > { %v2152_v34 = vpop.f32.mrf.mxu2  ;;  %v643_v15 = vsub.f32 %v506_v46, %v619_v36 }
  0xff   : > { %v2154_v37 = vpop.f32.mrf.mxu3  ;;  %vm659_vm7 = vcmp.ge.f32.partialorder %v643_v15, 0.0 }
 0x103   : > { %v509_v38 = vpop.f32.mrf.mxu0 }
 0x104   : > { %v622_v41 = vpop.f32.mrf.mxu1 }
 0x105   : > { %v2156_v40 = vpop.f32.mrf.mxu2  ;;  %v644_v0 = vsub.f32 %v509_v38, %v622_v41 }
 0x106   : > { %1586 = vmatmul.msk.bf16.gmra.mxu0 %vm445_vm0, %v2015_v5 }
 0x107   : > { %v2160_v42 = vpop.f32.mrf.mxu3  ;;  %1594 = vmatmul.msk.bf16.gmra.mxu1 %vm445_vm0, %v2020_v6  ;;  %v676_v16 = vmul.f32 0.05, %v644_v0  ;;  %vm660_vm4 = vcmp.ge.f32.partialorder %v644_v0, 0.0 }
 0x109   : > { %v692_v2 = vsel %vm660_vm4, %v644_v0, %v676_v16  ;;  %vm848_vm4 = vcmp.ge.f32.partialorder %v2138_v27, 0.0 }
 0x10a   : > { %1606 = vmatmul.msk.bf16.gmra.mxu2 %vm445_vm0, %v2015_v5 }
 0x10b   : > { %v511_v12 = vpop.f32.mrf.mxu0 }
 0x10c   : > { %1614 = vmatmul.msk.bf16.gmra.mxu3 %vm445_vm0, %v2020_v6  ;;  %v624_v52 = vpop.f32.mrf.mxu1 }
 0x10d   : > { %v765_v25 = vpop.f32.mrf.mxu2  ;;  %v645_v6 = vsub.f32 %v511_v12, %v624_v52  ;;  %v674_v12 = vmul.f32 0.05, %v642_v14 }
 0x10f   : > { %v814_v54 = vpop.f32.mrf.mxu3  ;;  %v677_v21 = vmul.f32 0.05, %v645_v6  ;;  %vm661_vm5 = vcmp.ge.f32.partialorder %v645_v6, 0.0  ;;  %v690_v0 = vsel %vm658_vm6, %v642_v14, %v674_v12 }
 0x111   : > { %v693_v4 = vsel %vm661_vm5, %v645_v6, %v677_v21 }
 0x113   : > { %v514_v55 = vpop.f32.mrf.mxu0 }
 0x114   : > { %v627_v58 = vpop.f32.mrf.mxu1 }
 0x115   : > { %v767_v57 = vpop.f32.mrf.mxu2  ;;  %v646_v61 = vsub.f32 %v514_v55, %v627_v58 }
 0x116   : > { %1587 = vmatmul.msk.bf16.gmra.mxu0 %vm445_vm0, %v2033_v28 }
 0x117   : > { %v816_v60 = vpop.f32.mrf.mxu3  ;;  %1595 = vmatmul.msk.bf16.gmra.mxu1 %vm445_vm0, %v2038_v29  ;;  %v678_v48 = vmul.f32 0.05, %v646_v61  ;;  %vm662_vm2 = vcmp.ge.f32.partialorder %v646_v61, 0.0 }
 0x119   : > { %v694_v26 = vsel %vm662_vm2, %v646_v61, %v678_v48  ;;  %v836_v61 = vsub.f32 %v765_v25, %v814_v54  ;;  %v702_v48 = vpack.c.bf16 %v693_v4, %v692_v2  ;;  %v834_v25 = vsub.f32 %v2152_v34, %v2154_v37 }
 0x11a   : > { %1607 = vmatmul.msk.bf16.gmra.mxu2 %vm445_vm0, %v2033_v28  ;;  %v641_v28 = vsub.f32 %v501_v18, %v614_v22  ;;  %v837_v18 = vsub.f32 %v767_v57, %v816_v60 }
 0x11b   : > { %v516_v5 = vpop.f32.mrf.mxu0  ;;  %v868_v2 = vmul.f32 0.05, %v836_v61  ;;  %vm852_vm13 = vcmp.ge.f32.partialorder %v836_v61, 0.0  ;;  %vm850_vm2 = vcmp.ge.f32.partialorder %v834_v25, 0.0 }
 0x11c   : > { %1615 = vmatmul.msk.bf16.gmra.mxu3 %vm445_vm0, %v2038_v29  ;;  %v629_v9 = vpop.f32.mrf.mxu1  ;;  %v675_v29 = vmul.f32 0.05, %v643_v15  ;;  %v673_v50 = vmul.f32 0.05, %v641_v28  ;;  %vm657_vm9 = vcmp.ge.f32.partialorder %v641_v28, 0.0  ;;  %vm853_vm12 = vcmp.ge.f32.partialorder %v837_v18, 0.0 }
 0x11d   : > { %v770_v7 = vpop.f32.mrf.mxu2  ;;  %v647_v44 = vsub.f32 %v516_v5, %v629_v9  ;;  %v869_v21 = vmul.f32 0.05, %v837_v18  ;;  %v884_v37 = vsel %vm852_vm13, %v836_v61, %v868_v2 }
 0x11e   : > { %v691_v6 = vsel %vm659_vm7, %v643_v15, %v675_v29  ;;  %v689_v16 = vsel %vm657_vm9, %v641_v28, %v673_v50 }
 0x11f   : > { %v819_v17 = vpop.f32.mrf.mxu3  ;;  %vm663_vm3 = vcmp.ge.f32.partialorder %v647_v44, 0.0  ;;  %v679_v55 = vmul.f32 0.05, %v647_v44  ;;  %v701_v4 = vpack.c.bf16 %v691_v6, %v690_v0 }
 0x120   : > { %v838_v58 = vsub.f32 %v770_v7, %v819_v17  ;;  %v835_v17 = vsub.f32 %v2156_v40, %v2160_v42  ;;  %v833_v40 = vsub.f32 %v2140_v32, %v2144_v51 }
 0x121   : > { %v695_v38 = vsel %vm663_vm3, %v647_v44, %v679_v55  ;;  %v688_v44 = vsel %vm656_vm8, %v2124_v11, %v672_v31 }
 0x122   : > { %v703_v52 = vpack.c.bf16 %v695_v38, %v694_v26  ;;  %v870_v9 = vmul.f32 0.05, %v838_v58  ;;  %vm854_vm10 = vcmp.ge.f32.partialorder %v838_v58, 0.0  ;;  %v867_v42 = vmul.f32 0.05, %v835_v17 }
 0x123   : > { %v927_v41 = vpop.f32.mrf.mxu0  ;;  %v885_v38 = vsel %vm853_vm12, %v837_v18, %v869_v21  ;;  %vm851_vm15 = vcmp.ge.f32.partialorder %v835_v17, 0.0  ;;  %v700_v12 = vpack.c.bf16 %v689_v16, %v688_v44  ;;  %v865_v32 = vmul.f32 0.05, %v833_v40 }
 0x124   : > { %v976_v36 = vpop.f32.mrf.mxu1  ;;  %1306 = vmatpush.bf16.msra.mxu1 %v703_v52  ;;  %v886_v54 = vsel %vm854_vm10, %v838_v58, %v870_v9  ;;  %v894_v31 = vpack.c.bf16 %v885_v38, %v884_v37  ;;  %v883_v51 = vsel %vm851_vm15, %v835_v17, %v867_v42  ;;  %vm849_vm3 = vcmp.ge.f32.partialorder %v833_v40, 0.0 }
 0x125   : > { %v772_v46 = vpop.f32.mrf.mxu2  ;;  %v1016_v22 = vsub.f32 %v927_v41, %v976_v36  ;;  %v866_v41 = vmul.f32 0.05, %v834_v25  ;;  %v864_v18 = vmul.f32 0.05, %v2138_v27 }
 0x127   : > { %v821_v5 = vpop.f32.mrf.mxu3  ;;  %v1048_v14 = vmul.f32 0.05, %v1016_v22  ;;  %vm1032_vm14 = vcmp.ge.f32.partialorder %v1016_v22, 0.0  ;;  %v882_v61 = vsel %vm850_vm2, %v834_v25, %v866_v41  ;;  %v880_v16 = vsel %vm848_vm4, %v2138_v27, %v864_v18 }
 0x128   : > { %v839_v7 = vsub.f32 %v772_v46, %v821_v5  ;;  %1307 = vmatpush.bf16.msra.mxu1 %v702_v48  ;;  %v893_v5 = vpack.c.bf16 %v883_v51, %v882_v61 }
 0x129   : > { %v2187_v58 = vsel %vm1032_vm14, %v1016_v22, %v1048_v14 }
 0x12a   : > { %vm855_vm11 = vcmp.ge.f32.partialorder %v839_v7, 0.0  ;;  %v871_v26 = vmul.f32 0.05, %v839_v7 }
 0x12b   : > { %v929_v57 = vpop.f32.mrf.mxu0 }
 0x12c   : > { %v887_v60 = vsel %vm855_vm11, %v839_v7, %v871_v26  ;;  %v978_v55 = vpop.f32.mrf.mxu1  ;;  %1308 = vmatpush.bf16.msra.mxu1 %v701_v4  ;;  %v881_v7 = vsel %vm849_vm3, %v833_v40, %v865_v32 }
 0x12d   : > { %v895_v15 = vpack.c.bf16 %v887_v60, %v886_v54  ;;  %v1119_v11 = vpop.f32.mrf.mxu2  ;;  %v1017_v28 = vsub.f32 %v929_v57, %v978_v55  ;;  %v892_v17 = vpack.c.bf16 %v881_v7, %v880_v16  ;;  %v2345_v60 = vpack.c.bf16 %v2092_v24, %v2090_v23 }
 0x12f   : > { %v1168_v34 = vpop.f32.mrf.mxu3  ;;  %1336 = vmatpush.bf16.msra.mxu3 %v895_v15  ;;  %vm1033_vm1 = vcmp.ge.f32.partialorder %v1017_v28, 0.0  ;;  %v1049_v29 = vmul.f32 0.05, %v1017_v28 }
 0x130   : > { %v1208_v52 = vsub.f32 %v1119_v11, %v1168_v34  ;;  %1309 = vmatpush.bf16.msra.mxu1 %v700_v12 }
 0x131   : > { %v2189_v46 = vsel %vm1033_vm1, %v1017_v28, %v1049_v29 }
 0x132   : > { %v1080_v36 = vpack.c.bf16 %v2189_v46, %v2187_v58  ;;  %v1240_v6 = vmul.f32 0.05, %v1208_v52  ;;  %vm1224_vm5 = vcmp.ge.f32.partialorder %v1208_v52, 0.0 }
 0x133   : > { %v932_v50 = vpop.f32.mrf.mxu0  ;;  %1337 = vmatpush.bf16.msra.mxu3 %v894_v31 }
 0x134   : > { %v981_v48 = vpop.f32.mrf.mxu1  ;;  %1310 = vmatpush.bf16.msra.mxu1 %v699_v49  ;;  %v2202_v8 = vsel %vm1224_vm5, %v1208_v52, %v1240_v6 }
 0x135   : > { %v1121_v22 = vpop.f32.mrf.mxu2  ;;  %v1018_v9 = vsub.f32 %v932_v50, %v981_v48 }
 0x137   : > { %v1170_v0 = vpop.f32.mrf.mxu3  ;;  %1338 = vmatpush.bf16.msra.mxu3 %v893_v5  ;;  %v1050_v1 = vmul.f32 0.05, %v1018_v9  ;;  %vm1034_vm7 = vcmp.ge.f32.partialorder %v1018_v9, 0.0 }
 0x138   : > { %v1209_v44 = vsub.f32 %v1121_v22, %v1170_v0  ;;  %1311 = vmatpush.bf16.msra.mxu1 %v698_v47 }
 0x139   : > { %v2214_v4 = vsel %vm1034_vm7, %v1018_v9, %v1050_v1 }
 0x13a   : > { %vm1225_vm6 = vcmp.ge.f32.partialorder %v1209_v44, 0.0  ;;  %v1241_v21 = vmul.f32 0.05, %v1209_v44 }
 0x13b   : > { %v934_v26 = vpop.f32.mrf.mxu0  ;;  %1339 = vmatpush.bf16.msra.mxu3 %v892_v17 }
 0x13c   : > { %v2204_v49 = vsel %vm1225_vm6, %v1209_v44, %v1241_v21  ;;  %v983_v25 = vpop.f32.mrf.mxu1  ;;  %1312 = vmatpush.bf16.msra.mxu1 %v697_v45 }
 0x13d   : > { %v1124_v57 = vpop.f32.mrf.mxu2  ;;  %v1019_v35 = vsub.f32 %v934_v26, %v983_v25 }
 0x13f   : > { %v1173_v47 = vpop.f32.mrf.mxu3  ;;  %1340 = vmatpush.bf16.msra.mxu3 %v891_v3  ;;  %vm1035_vm8 = vcmp.ge.f32.partialorder %v1019_v35, 0.0  ;;  %v1051_v2 = vmul.f32 0.05, %v1019_v35 }
 0x140   : > { %v1210_v27 = vsub.f32 %v1124_v57, %v1173_v47  ;;  %1313 = vmatpush.bf16.msra.mxu1 %v696_v30 }
 0x141   : > { %v2219_v13 = vsel %vm1035_vm8, %v1019_v35, %v1051_v2 }
 0x142   : > { %v1081_v45 = vpack.c.bf16 %v2219_v13, %v2214_v4  ;;  %v1242_v43 = vmul.f32 0.05, %v1210_v27  ;;  %vm1226_vm9 = vcmp.ge.f32.partialorder %v1210_v27, 0.0  ;;  %v2347_v4 = vpack.c.bf16 %v2204_v49, %v2202_v8 }
 0x143   : > { %v937_v10 = vpop.f32.mrf.mxu0  ;;  %1341 = vmatpush.bf16.msra.mxu3 %v890_v59 }
 0x144   : > { %v986_v20 = vpop.f32.mrf.mxu1  ;;  %v2232_v59 = vsel %vm1226_vm9, %v1210_v27, %v1242_v43 }
 0x145   : > { %v1126_v19 = vpop.f32.mrf.mxu2  ;;  %v1020_v3 = vsub.f32 %v937_v10, %v986_v20 }
 0x147   : > { %v1175_v54 = vpop.f32.mrf.mxu3  ;;  %1342 = vmatpush.bf16.msra.mxu3 %v2345_v60  ;;  %v1052_v56 = vmul.f32 0.05, %v1020_v3  ;;  %vm1036_vm11 = vcmp.ge.f32.partialorder %v1020_v3, 0.0 }
 0x148   : > { %v1211_v53 = vsub.f32 %v1126_v19, %v1175_v54 }
 0x149   : > { %v2238_v38 = vsel %vm1036_vm11, %v1020_v3, %v1052_v56 }
 0x14a   : > { %vm1227_vm10 = vcmp.ge.f32.partialorder %v1211_v53, 0.0  ;;  %v1243_v30 = vmul.f32 0.05, %v1211_v53 }
 0x14b   : > { %v939_v14 = vpop.f32.mrf.mxu0  ;;  %1343 = vmatpush.bf16.msra.mxu3 %v2346_v39 }
 0x14c   : > { %v2234_v15 = vsel %vm1227_vm10, %v1211_v53, %v1243_v30  ;;  %v988_v55 = vpop.f32.mrf.mxu1 }
 0x14d   : > { %v1129_v11 = vpop.f32.mrf.mxu2  ;;  %v1273_v23 = vpack.c.bf16 %v2234_v15, %v2232_v59  ;;  %v1021_v24 = vsub.f32 %v939_v14, %v988_v55 }
 0x14f   : > { %v1178_v40 = vpop.f32.mrf.mxu3  ;;  %vm1037_vm12 = vcmp.ge.f32.partialorder %v1021_v24, 0.0  ;;  %v1053_v28 = vmul.f32 0.05, %v1021_v24 }
 0x150   : > { %v1212_v42 = vsub.f32 %v1129_v11, %v1178_v40 }
 0x151   : > { %v2240_v63 = vsel %vm1037_vm12, %v1021_v24, %v1053_v28 }
 0x152   : > { %v1082_v41 = vpack.c.bf16 %v2240_v63, %v2238_v38  ;;  %v1244_v29 = vmul.f32 0.05, %v1212_v42  ;;  %vm1228_vm13 = vcmp.ge.f32.partialorder %v1212_v42, 0.0 }
 0x153   : > { %v942_v62 = vpop.f32.mrf.mxu0 }
 0x154   : > { %v991_v37 = vpop.f32.mrf.mxu1  ;;  %v2244_v18 = vsel %vm1228_vm13, %v1212_v42, %v1244_v29 }
 0x155   : > { %v1131_v34 = vpop.f32.mrf.mxu2  ;;  %v1022_v12 = vsub.f32 %v942_v62, %v991_v37 }
 0x157   : > { %v1180_v52 = vpop.f32.mrf.mxu3  ;;  %v1054_v50 = vmul.f32 0.05, %v1022_v12  ;;  %vm1038_vm15 = vcmp.ge.f32.partialorder %v1022_v12, 0.0 }
 0x158   : > { %v1213_v31 = vsub.f32 %v1131_v34, %v1180_v52 }
 0x159   : > { %v2250_v44 = vsel %vm1038_vm15, %v1022_v12, %v1054_v50 }
 0x15a   : > { %vm1229_vm14 = vcmp.ge.f32.partialorder %v1213_v31, 0.0  ;;  %v1245_v32 = vmul.f32 0.05, %v1213_v31 }
 0x15b   : > { %v944_v51 = vpop.f32.mrf.mxu0 }
 0x15c   : > { %v2246_v61 = vsel %vm1229_vm14, %v1213_v31, %v1245_v32  ;;  %v993_v5 = vpop.f32.mrf.mxu1 }
 0x15d   : > { %v1134_v22 = vpop.f32.mrf.mxu2  ;;  %v1274_v48 = vpack.c.bf16 %v2246_v61, %v2244_v18  ;;  %v1023_v9 = vsub.f32 %v944_v51, %v993_v5 }
 0x15f   : > { %v1183_v7 = vpop.f32.mrf.mxu3  ;;  %vm1039_vm1 = vcmp.ge.f32.partialorder %v1023_v9, 0.0  ;;  %v1055_v6 = vmul.f32 0.05, %v1023_v9 }
 0x160   : > { %v1214_v0 = vsub.f32 %v1134_v22, %v1183_v7 }
 0x161   : > { %v2252_v17 = vsel %vm1039_vm1, %v1023_v9, %v1055_v6 }
 0x162   : > { %v1083_v21 = vpack.c.bf16 %v2252_v17, %v2250_v44  ;;  %v1246_v35 = vmul.f32 0.05, %v1214_v0  ;;  %vm1230_vm2 = vcmp.ge.f32.partialorder %v1214_v0, 0.0  ;;  %v1647_v44 = vld [vmem:[%s2342_s6] sm:$0xff] }
 0x163   : > { %v947_v16 = vpop.f32.mrf.mxu0 }
 0x164   : > { %v996_v1 = vpop.f32.mrf.mxu1  ;;  %v2258_v10 = vsel %vm1230_vm2, %v1214_v0, %v1246_v35 }
 0x165   : > { %v1136_v26 = vpop.f32.mrf.mxu2  ;;  %v2256_v57 = vsub.f32 %v947_v16, %v996_v1 }
 0x167   : > { %v1185_v25 = vpop.f32.mrf.mxu3  ;;  %vm1040_vm10 = vcmp.ge.f32.partialorder %v2256_v57, 0.0 }
 0x168   : > { %v1215_v47 = vsub.f32 %v1136_v26, %v1185_v25 }
 0x16a   : > { %vm1231_vm3 = vcmp.ge.f32.partialorder %v1215_v47, 0.0  ;;  %v1247_v27 = vmul.f32 0.05, %v1215_v47 }
 0x16b   : > { %v949_v2 = vpop.f32.mrf.mxu0 }
 0x16c   : > { %v2260_v19 = vsel %vm1231_vm3, %v1215_v47, %v1247_v27  ;;  %v998_v3 = vpop.f32.mrf.mxu1 }
 0x16d   : > { %v1139_v20 = vpop.f32.mrf.mxu2  ;;  %v1275_v54 = vpack.c.bf16 %v2260_v19, %v2258_v10 }
 0x16f   : > { %v1188_v60 = vpop.f32.mrf.mxu3 }
 0x170   : > { %v2264_v43 = vsub.f32 %v1139_v20, %v1188_v60 }
 0x173   : > { %v952_v53 = vpop.f32.mrf.mxu0 }
 0x174   : > { %v1001_v14 = vpop.f32.mrf.mxu1 }
 0x175   : > { %v2266_v30 = vpop.f32.mrf.mxu2  ;;  %v1026_v26 = vsub.f32 %v952_v53, %v1001_v14  ;;  %v1646_v53 = vld [vmem:[%s2341_s5] sm:$0xff] }
 0x176   : > { %1344 = vmatmul.bf16.vlgmr.msra.gmra.mxu3 %v1646_v53  ;;  %1314 = vmatmul.bf16.vlgmr.msra.gmra.mxu1 %v1646_v53 }
 0x177   : > { %v2268_v39 = vpop.f32.mrf.mxu3  ;;  %vm1042_vm8 = vcmp.ge.f32.partialorder %v1026_v26, 0.0 }
 0x17b   : > { %v954_v56 = vpop.f32.mrf.mxu0 }
 0x17c   : > { %v1003_v55 = vpop.f32.mrf.mxu1 }
 0x17d   : > { %v2270_v11 = vpop.f32.mrf.mxu2  ;;  %v1027_v1 = vsub.f32 %v954_v56, %v1003_v55  ;;  %v1056_v56 = vmul.f32 0.05, %v2256_v57 }
 0x17f   : > { %v2272_v24 = vpop.f32.mrf.mxu3  ;;  %vm1043_vm9 = vcmp.ge.f32.partialorder %v1027_v1, 0.0 }
 0x183   : > { %v957_v40 = vpop.f32.mrf.mxu0 }
 0x184   : > { %v1006_v28 = vpop.f32.mrf.mxu1 }
 0x185   : > { %v1146_v42 = vpop.f32.mrf.mxu2  ;;  %v1028_v22 = vsub.f32 %v957_v40, %v1006_v28  ;;  %v1058_v40 = vmul.f32 0.05, %v1026_v26 }
 0x187   : > { %v1195_v62 = vpop.f32.mrf.mxu3  ;;  %v1060_v25 = vmul.f32 0.05, %v1028_v22  ;;  %vm1044_vm6 = vcmp.ge.f32.partialorder %v1028_v22, 0.0 }
 0x18b   : > { %v959_v34 = vpop.f32.mrf.mxu0 }
 0x18c   : > { %v1008_v12 = vpop.f32.mrf.mxu1 }
 0x18d   : > { %v1149_v37 = vpop.f32.mrf.mxu2  ;;  %v1029_v9 = vsub.f32 %v959_v34, %v1008_v12  ;;  %v1059_v34 = vmul.f32 0.05, %v1027_v1 }
 0x18f   : > { %v1198_v52 = vpop.f32.mrf.mxu3  ;;  %v1061_v47 = vmul.f32 0.05, %v1029_v9  ;;  %vm1045_vm7 = vcmp.ge.f32.partialorder %v1029_v9, 0.0 }
 0x191   : > { %v1077_v33 = vsel %vm1045_vm7, %v1029_v9, %v1061_v47 }
 0x193   : > { %v962_v29 = vpop.f32.mrf.mxu0 }
 0x194   : > { %v1011_v32 = vpop.f32.mrf.mxu1 }
 0x195   : > { %v1151_v31 = vpop.f32.mrf.mxu2  ;;  %v1030_v50 = vsub.f32 %v962_v29, %v1011_v32  ;;  %v1025_v29 = vsub.f32 %v949_v2, %v998_v3  ;;  %v1076_v32 = vsel %vm1044_vm6, %v1028_v22, %v1060_v25  ;;  %v1074_v22 = vsel %vm1042_vm8, %v1026_v26, %v1058_v40 }
 0x197   : > { %v1200_v51 = vpop.f32.mrf.mxu3  ;;  %v1062_v7 = vmul.f32 0.05, %v1030_v50  ;;  %vm1046_vm4 = vcmp.ge.f32.partialorder %v1030_v50, 0.0  ;;  %vm1041_vm11 = vcmp.ge.f32.partialorder %v1025_v29, 0.0  ;;  %v1057_v2 = vmul.f32 0.05, %v1025_v29 }
 0x198   : > { %v1221_v55 = vsub.f32 %v1151_v31, %v1200_v51  ;;  %v1072_v51 = vsel %vm1040_vm10, %v2256_v57, %v1056_v56 }
 0x199   : > { %v1078_v27 = vsel %vm1046_vm4, %v1030_v50, %v1062_v7  ;;  %v1086_v50 = vpack.c.bf16 %v1077_v33, %v1076_v32  ;;  %v1073_v33 = vsel %vm1041_vm11, %v1025_v29, %v1057_v2  ;;  %v1248_v29 = vmul.f32 0.05, %v2264_v43 }
 0x19a   : > { %vm1237_vm14 = vcmp.ge.f32.partialorder %v1221_v55, 0.0  ;;  %vm1232_vm4 = vcmp.ge.f32.partialorder %v2264_v43, 0.0 }
 0x19b   : > { %v964_v5 = vpop.f32.mrf.mxu0 }
 0x19c   : > { %v1013_v6 = vpop.f32.mrf.mxu1 }
 0x19d   : > { %v1154_v0 = vpop.f32.mrf.mxu2  ;;  %v1031_v16 = vsub.f32 %v964_v5, %v1013_v6  ;;  %v1220_v5 = vsub.f32 %v1149_v37, %v1198_v52  ;;  %v1219_v6 = vsub.f32 %v1146_v42, %v1195_v62  ;;  %v1218_v37 = vsub.f32 %v2270_v11, %v2272_v24 }
 0x19e   : > { %v1217_v42 = vsub.f32 %v2266_v30, %v2268_v39 }
 0x19f   : > { %v1203_v35 = vpop.f32.mrf.mxu3  ;;  %vm1047_vm5 = vcmp.ge.f32.partialorder %v1031_v16, 0.0  ;;  %v1063_v20 = vmul.f32 0.05, %v1031_v16  ;;  %v1252_v52 = vmul.f32 0.05, %v1220_v5  ;;  %vm1236_vm15 = vcmp.ge.f32.partialorder %v1220_v5, 0.0 }
 0x1a0   : > { %v1222_v12 = vsub.f32 %v1154_v0, %v1203_v35  ;;  %v1075_v0 = vsel %vm1043_vm9, %v1027_v1, %v1059_v34  ;;  %v1251_v62 = vmul.f32 0.05, %v1219_v6  ;;  %vm1235_vm1 = vcmp.ge.f32.partialorder %v1219_v6, 0.0 }
 0x1a1   : > { %v1079_v60 = vsel %vm1047_vm5, %v1031_v16, %v1063_v20  ;;  %v1253_v16 = vmul.f32 0.05, %v1221_v55  ;;  %v1085_v31 = vpack.c.bf16 %v1075_v0, %v1074_v22  ;;  %v1250_v57 = vmul.f32 0.05, %v1218_v37 }
 0x1a2   : > { %v1087_v28 = vpack.c.bf16 %v1079_v60, %v1078_v27  ;;  %v1254_v9 = vmul.f32 0.05, %v1222_v12  ;;  %vm1238_vm12 = vcmp.ge.f32.partialorder %v1222_v12, 0.0  ;;  %v1084_v27 = vpack.c.bf16 %v1073_v33, %v1072_v51 }
 0x1a3   : > { %v1269_v47 = vsel %vm1237_vm14, %v1221_v55, %v1253_v16  ;;  %v1268_v20 = vsel %vm1236_vm15, %v1220_v5, %v1252_v52  ;;  %vm1234_vm2 = vcmp.ge.f32.partialorder %v1218_v37, 0.0  ;;  %v1249_v11 = vmul.f32 0.05, %v1217_v42 }
 0x1a4   : > { %1286 = vmatpush.bf16.msra.mxu0 %v1087_v28  ;;  %v1270_v26 = vsel %vm1238_vm12, %v1222_v12, %v1254_v9  ;;  %v1278_v60 = vpack.c.bf16 %v1269_v47, %v1268_v20  ;;  %v1267_v24 = vsel %vm1235_vm1, %v1219_v6, %v1251_v62  ;;  %vm1233_vm3 = vcmp.ge.f32.partialorder %v1217_v42, 0.0 }
 0x1a5   : > { %v1156_v14 = vpop.f32.mrf.mxu2  ;;  %v1266_v40 = vsel %vm1234_vm2, %v1218_v37, %v1250_v57  ;;  %v1265_v39 = vsel %vm1233_vm3, %v1217_v42, %v1249_v11  ;;  %v1264_v28 = vsel %vm1232_vm4, %v2264_v43, %v1248_v29 }
 0x1a6   : > { %v1277_v30 = vpack.c.bf16 %v1267_v24, %v1266_v40  ;;  %v1276_v34 = vpack.c.bf16 %v1265_v39, %v1264_v28 }
 0x1a7   : > { %v1205_v3 = vpop.f32.mrf.mxu3 }
 0x1a8   : > { %v1223_v7 = vsub.f32 %v1156_v14, %v1205_v3  ;;  %1287 = vmatpush.bf16.msra.mxu0 %v1086_v50 }
 0x1aa   : > { %vm1239_vm13 = vcmp.ge.f32.partialorder %v1223_v7, 0.0  ;;  %v1255_v25 = vmul.f32 0.05, %v1223_v7 }
 0x1ac   : > { %v1271_v1 = vsel %vm1239_vm13, %v1223_v7, %v1255_v25  ;;  %1288 = vmatpush.bf16.msra.mxu0 %v1085_v31 }
 0x1ad   : > { %v1279_v35 = vpack.c.bf16 %v1271_v1, %v1270_v26 }
 0x1af   : > { %1322 = vmatpush.bf16.msra.mxu2 %v1279_v35 }
 0x1b0   : > { %1289 = vmatpush.bf16.msra.mxu0 %v1084_v27 }
 0x1b3   : > { %1323 = vmatpush.bf16.msra.mxu2 %v1278_v60 }
 0x1b4   : > { %1290 = vmatpush.bf16.msra.mxu0 %v1083_v21 }
 0x1b7   : > { %1324 = vmatpush.bf16.msra.mxu2 %v1277_v30 }
 0x1b8   : > { %1291 = vmatpush.bf16.msra.mxu0 %v1082_v41 }
 0x1bb   : > { %1325 = vmatpush.bf16.msra.mxu2 %v1276_v34 }
 0x1bc   : > { %1292 = vmatpush.bf16.msra.mxu0 %v1081_v45 }
 0x1bf   : > { %1326 = vmatpush.bf16.msra.mxu2 %v1275_v54 }
 0x1c0   : > { %1293 = vmatpush.bf16.msra.mxu0 %v1080_v36 }
 0x1c3   : > { %1327 = vmatpush.bf16.msra.mxu2 %v1274_v48  ;;  %1294 = vmatmul.bf16.vlgmr.msra.gmra.mxu0 %v1647_v44 }
 0x1c7   : > { %1328 = vmatpush.bf16.msra.mxu2 %v1273_v23 }
 0x1cb   : > { %1329 = vmatpush.bf16.msra.mxu2 %v2347_v4 }
 0x1ce   : > { %1330 = vmatmul.bf16.vlgmr.msra.gmra.mxu2 %v1647_v44 }
 0x1f3   : > { %v1315_v13 = vpop.f32.mrf.mxu1 }
 0x1f9   : > { %v1345_v59 = vpop.f32.mrf.mxu3 }
 0x1fb   : > { %v1317_v46 = vpop.f32.mrf.mxu1 }
 0x201   : > { %v1347_v23 = vpop.f32.mrf.mxu3 }
 0x240   : > { %v1295_v45 = vpop.f32.mrf.mxu0 }
 0x241   : > { %v1316_v58 = vadd.f32 %v1315_v13, %v1295_v45 }
 0x243   : > { %1320 = vst.msk [vmem:[%s336_s17] sm:$0xff] %vm445_vm0, %v1316_v58 }
 0x248   : > { %v1297_v36 = vpop.f32.mrf.mxu0 }
 0x249   : > { %v1318_v38 = vadd.f32 %v1317_v46, %v1297_v36 }
 0x24b   : > { %1321 = vst.msk [vmem:[%s336_s17 + $0x8] sm:$0xff] %vm445_vm0, %v1318_v38 }
 0x251   : > { %v1331_v15 = vpop.f32.mrf.mxu2 }
 0x252   : > { %v1346_v8 = vadd.f32 %v1345_v59, %v1331_v15 }
 0x254   : > { %1624 = vst.msk [vmem:[%s336_s17 + $0x10] sm:$0xff] %vm445_vm0, %v1346_v8 }
 0x259   : > { %v1333_v49 = vpop.f32.mrf.mxu2 }
 0x25a   : > { %v1348_v63 = vadd.f32 %v1347_v23, %v1333_v49 }
 0x25c   : > { %1625 = vst.msk [vmem:[%s336_s17 + $0x18] sm:$0xff] %vm445_vm0, %v1348_v63 }
 0x25d PF: > { %s19_s26 = sadd.s32 1, %s1762_s26   ;;  %s2348_s24 = smov %s1758_s25 }
 0x25e   : > { %p16_p8 = scmp.ge.s32.totalorder %s19_s26, 4   ;;  %s2349_s25 = smov %s2351_s28 }
 0x260   :  { %18 = sbr.rel (!%p16_p8) target bundleno = 3 (0x3), region = 89 }
 0x265   :  { %1380 = vsyncpa [#allocation3], 1 }
 0x266   :  { %1382 = vsyncpa [#allocation3 + $0x1], 1 }
 0x267   :  { %1383 = vsyncpa [#allocation5], 1 }

// kernel: dual_fourier_unit.2
= control target key start
LH: loop header
LB: loop body
LE: loop exit
PB: predicated region body
PF: predicated region fallthrough
CT: control target
= control target key end

     0   :  { %12 = vsyncpa [#allocation3], 0  ;;  %s1396_s0 = inlined_call_operand.vmem [shape: bf16[2,2,16,16], index: 0, kind: input, shape index: {}]   ;;  %s1397_s1 = inlined_call_operand.vmem [shape: f32[4,2], index: 1, kind: input, shape index: {}]   ;;  %s1398_s2 = inlined_call_operand.vmem [shape: f32[4,2], index: 2, kind: input, shape index: {}]   ;;  %s1399_s3 = inlined_call_operand.vmem [shape: bf16[16,128], index: 3, kind: input, shape index: {}]   ;;  %s1400_s4 = inlined_call_operand.vmem [shape: bf16[16,128], index: 4, kind: input, shape index: {}]   ;;  %s1401_s5 = inlined_call_operand.vmem [shape: bf16[128,16], index: 5, kind: input, shape index: {}]   ;;  %s1402_s6 = inlined_call_operand.vmem [shape: bf16[128,16], index: 6, kind: input, shape index: {}]   ;;  %s1403_s7 = inlined_call_operand.vmem [shape: f32[2,2,16,16], index: 7, kind: output, shape index: {}]  }
   0x1   :  { %13 = vsyncpa [#allocation5], 0  ;;  %s1222_s24 = smov 0   ;;  %s1224_s25 = smov 0  }
   0x2   :  { %s1226_s26 = smov 0  }
   0x3 LB: > { %s933_s27 = sadd.s32 4294967295, %s1178_s26   ;;  %s31_s28 = sadd.s32 1, %s1174_s25  ;;  %s1178_s26 = sphi %s1226_s26, %s19_s26   ;;  %s1174_s25 = sphi %s1224_s25, %s1406_s25   ;;  %s1170_s24 = sphi %s1222_s24, %s1405_s24  }
   0x4   : > { %p33_p0 = scmp.ge.s32.totalorder %s31_s28, 2  ;;  %p935_p1 = scmp.ge.s32.totalorder %s1178_s26, 1 }
   0x5   : > { %p218_p2 = scmp.lt.s32.totalorder %s1178_s26, 3  ;;  %p1243_p4 = scmp.eq.s32.totalorder %s933_s27, 0 }
   0x6   : > { %s1408_s28 = smov (%p33_p0, %s31_s28), 0  ;;  %s230_s9 = sshll.u32 %s1397_s1, 4  ;;  %s231_s9 = int_to_ptr.vmem [resolvable:$true] %s230_s9 }
   0x7   : > { %p219_p3 = pnand %p935_p1, %p218_p2  ;;  %s240_s12 = sshll.u32 %s1398_s2, 4  ;;  %s241_s12 = int_to_ptr.vmem [resolvable:$true] %s240_s12 }
   0x8   : > { %s1180_s13 = smov [#allocation2]   ;;  %s1181_s14 = smov [#allocation4]  }
   0x9   : > { %p1081_p5 = pneg %p219_p3 }
   0xa   : > { %278 = sbr.rel (%p219_p3) target bundleno = 376 (0x178), region = 48 }
   0xb   : > { %p1082_p6 = pnand %p1243_p4, %p1081_p5 }
   0xd   : > { %1084 = dma.vmem_to_smem (!%p1082_p6), %s231_s9, 64, %s1180_s13, [#allocation3]  }
   0xe   : > { %1087 = dma.vmem_to_smem (!%p1082_p6), %s241_s12, 64, %s1181_s14, [#allocation5]  }
   0xf   : > { %1161 = dma.done.wait (%p1243_p4), [#allocation3], 64  }
  0x10   : > { %1163 = vsyncadd (%p1243_p4), [#allocation3], 4294967232 }
  0x11   : > { %1165 = dma.done.wait (%p1243_p4), [#allocation5], 64  }
  0x12   : > { %1167 = vsyncadd (%p1243_p4), [#allocation5], 4294967232 }
  0x13   : > { %290 = sfence }
  0x14   : > { %v1046_v0 = vld [vmem:[%s1399_s3] sm:$0xff]  ;;  %p326_p7 = scmp.lt.s32.totalorder %s1170_s24, 1  ;;  %s387_s19 = sld [smem:[#allocation2]]  ;;  %vm533_vm0 = vcmask 130048  }
  0x15   : > { %v1047_v1 = vld [vmem:[%s1400_s4] sm:$0xff]  ;;  %s948_s20 = sld [smem:[#allocation2 + $0x1]]  ;;  %553 = vmatpush.bf16.msra.mxu0 %v1046_v0 }
  0x16   : > { %600 = vmatpush.bf16.msra.mxu1 %v1047_v1  ;;  %s1410_s24 = smov (!%p326_p7, %s1170_s24), 1  ;;  %s459_s21 = sld [smem:[#allocation4]] }
  0x17   : > { %s1044_s22 = sshll.u32 %s1410_s24, 4  ;;  %s955_s23 = sld [smem:[#allocation4 + $0x1]] }
  0x18   : > { %s333_s30 = scalar_lea.vmem %s1396_s0, %s1044_s22  ;;  %s949_s8 = sld [smem:[#allocation2 + $0x80]] }
  0x19   : > { %v1065_v2 = vld [vmem:[%s333_s30] sm:$0xff]   ;;  %v1072_v3 = vld [vmem:[%s333_s30 + $0x8] sm:$0xff]   ;;  %s950_s9 = sld [smem:[#allocation2 + $0x81]] }
  0x1a   : > { %v390_v4 = vstv %s387_s19  ;;  %v1277_v5 = vunpack.c.l.bf16 %v1065_v2  ;;  %v1279_v6 = vunpack.c.h.bf16 %v1065_v2  ;;  %v1281_v7 = vunpack.c.l.bf16 %v1072_v3  ;;  %s1285_s10 = sld [smem:[#allocation4 + $0x80]] }
  0x1b   : > { %v1283_v8 = vunpack.c.h.bf16 %v1072_v3  ;;  %v396_v9 = vstv %s948_s20  ;;  %s1287_s11 = sld [smem:[#allocation4 + $0x81]] }
  0x1c   : > { %v391_v10 = vmul.f32 %v1277_v5, %v390_v4  ;;  %v392_v11 = vmul.f32 %v1279_v6, %v390_v4  ;;  %v397_v12 = vmul.f32 %v1281_v7, %v396_v9  ;;  %v460_v14 = vstv %s459_s21  ;;  %s951_s12 = sld [smem:[#allocation2 + $0x100]] }
  0x1d   : > { %v398_v13 = vmul.f32 %v1283_v8, %v396_v9  ;;  %v464_v15 = vstv %s955_s23  ;;  %v461_v18 = vmul.f32 %v1277_v5, %v460_v14  ;;  %v462_v19 = vmul.f32 %v1279_v6, %v460_v14  ;;  %s952_s13 = sld [smem:[#allocation2 + $0x101]] }
  0x1e   : > { %v399_v16 = vadd.f32 %v397_v12, %v391_v10  ;;  %v465_v20 = vmul.f32 %v1281_v7, %v464_v15  ;;  %v466_v21 = vmul.f32 %v1283_v8, %v464_v15  ;;  %v404_v22 = vstv %s949_s8  ;;  %s958_s14 = sld [smem:[#allocation4 + $0x100]] }
  0x1f   : > { %v400_v17 = vadd.f32 %v398_v13, %v392_v11  ;;  %v408_v23 = vstv %s950_s9  ;;  %v405_v26 = vmul.f32 %v1277_v5, %v404_v22  ;;  %v406_v27 = vmul.f32 %v1279_v6, %v404_v22  ;;  %s959_s15 = sld [smem:[#allocation4 + $0x101]] }
  0x20   : > { %v401_v24 = vpack.c.bf16 %v399_v16, %v399_v16  ;;  %v467_v28 = vadd.f32 %v465_v20, %v461_v18  ;;  %v468_v29 = vadd.f32 %v466_v21, %v462_v19  ;;  %v409_v30 = vmul.f32 %v1281_v7, %v408_v23  ;;  %s953_s16 = sld [smem:[#allocation2 + $0x180]]  ;;  %v1055_v16 = vld [vmem:[%s1401_s5 + $0x38] sm:$0xff]  ;;  %v1054_v19 = vld [vmem:[%s1401_s5 + $0x30] sm:$0xff] }
  0x21   : > { %v402_v25 = vpack.c.bf16 %v400_v17, %v400_v17  ;;  %v410_v31 = vmul.f32 %v1283_v8, %v408_v23  ;;  %v472_v34 = vstv %s1285_s10  ;;  %v476_v35 = vstv %s1287_s11  ;;  %s954_s17 = sld [smem:[#allocation2 + $0x181]]  ;;  %801 = vmatpush.bf16.msra.mxu3 %v1055_v16  ;;  %v1056_v16 = vld [vmem:[%s1402_s6] sm:$0xff] }
  0x22   : > { %v441_v32 = vunpack.c.l.b16 %v401_v24  ;;  %v469_v36 = vpack.c.bf16 %v467_v28, %v467_v28  ;;  %v470_v37 = vpack.c.bf16 %v468_v29, %v468_v29  ;;  %v473_v39 = vmul.f32 %v1277_v5, %v472_v34  ;;  %s960_s18 = sld [smem:[#allocation4 + $0x180]] }
  0x23   : > { %v442_v33 = vunpack.c.l.b16 %v402_v25  ;;  %v474_v42 = vmul.f32 %v1279_v6, %v472_v34  ;;  %v477_v43 = vmul.f32 %v1281_v7, %v476_v35  ;;  %v411_v44 = vadd.f32 %v409_v30, %v405_v26  ;;  %s961_s21 = sld [smem:[#allocation4 + $0x181]]  ;;  %v1053_v26 = vld [vmem:[%s1401_s5 + $0x28] sm:$0xff] }
  0x24   : > { %v509_v40 = vunpack.c.l.b16 %v469_v36  ;;  %v510_v41 = vunpack.c.l.b16 %v470_v37  ;;  %v412_v45 = vadd.f32 %v410_v31, %v406_v27  ;;  %v478_v46 = vmul.f32 %v1283_v8, %v476_v35 }
  0x25   : > { %v443_v38 = vpack.c.b16 %v442_v33, %v441_v32  ;;  %v479_v48 = vadd.f32 %v477_v43, %v473_v39  ;;  %v413_v50 = vpack.c.bf16 %v411_v44, %v411_v44  ;;  %v416_v54 = vstv %s951_s12  ;;  %802 = vmatpush.bf16.msra.mxu3 %v1054_v19 }
  0x26   : > { %v511_v47 = vpack.c.b16 %v510_v41, %v509_v40  ;;  %v480_v49 = vadd.f32 %v478_v46, %v474_v42  ;;  %v414_v51 = vpack.c.bf16 %v412_v45, %v412_v45  ;;  %v420_v57 = vstv %s952_s13 }
  0x27   : > { %966 = vmatmul.msk.bf16.vlgmr.msra.gmra.mxu0 %vm533_vm0, %v443_v38  ;;  %v481_v52 = vpack.c.bf16 %v479_v48, %v479_v48  ;;  %v446_v55 = vunpack.c.l.b16 %v413_v50  ;;  %v417_v58 = vmul.f32 %v1277_v5, %v416_v54  ;;  %v418_v61 = vmul.f32 %v1279_v6, %v416_v54  ;;  %v1049_v54 = vld [vmem:[%s1401_s5 + $0x8] sm:$0xff] }
  0x28   : > { %974 = vmatmul.msk.bf16.vlgmr.msra.gmra.mxu1 %vm533_vm0, %v511_v47  ;;  %v482_v53 = vpack.c.bf16 %v480_v49, %v480_v49  ;;  %v447_v56 = vunpack.c.l.b16 %v414_v51  ;;  %v484_v62 = vstv %s958_s14  ;;  %v421_v0 = vmul.f32 %v1281_v7, %v420_v57  ;;  %s1045_s14 = sshll.u32 %s1410_s24, 5 }
  0x29   : > { %v514_v59 = vunpack.c.l.b16 %v481_v52  ;;  %v422_v1 = vmul.f32 %v1283_v8, %v420_v57  ;;  %v488_v2 = vstv %s959_s15  ;;  %v485_v3 = vmul.f32 %v1277_v5, %v484_v62  ;;  %803 = vmatpush.bf16.msra.mxu3 %v1053_v26  ;;  %v1051_v52 = vld [vmem:[%s1401_s5 + $0x18] sm:$0xff]  ;;  %v1062_v57 = vld [vmem:[%s1402_s6 + $0x30] sm:$0xff] }
  0x2a   : > { %v515_v60 = vunpack.c.l.b16 %v482_v53  ;;  %v448_v63 = vpack.c.b16 %v447_v56, %v446_v55  ;;  %v486_v9 = vmul.f32 %v1279_v6, %v484_v62  ;;  %v489_v10 = vmul.f32 %v1281_v7, %v488_v2  ;;  %v1050_v53 = vld [vmem:[%s1401_s5 + $0x10] sm:$0xff]  ;;  %v1048_v55 = vld [vmem:[%s1401_s5] sm:$0xff]  ;;  %v1063_v56 = vld [vmem:[%s1402_s6 + $0x38] sm:$0xff] }
  0x2b   : > { %v490_v11 = vmul.f32 %v1283_v8, %v488_v2  ;;  %v423_v12 = vadd.f32 %v421_v0, %v417_v58  ;;  %v424_v13 = vadd.f32 %v422_v1, %v418_v61  ;;  %v428_v22 = vstv %s953_s16  ;;  %722 = vmatpush.bf16.msra.mxu2 %v1063_v56  ;;  %v1061_v58 = vld [vmem:[%s1402_s6 + $0x28] sm:$0xff]  ;;  %v1058_v2 = vld [vmem:[%s1402_s6 + $0x10] sm:$0xff] }
  0x2c   : > { %v516_v4 = vpack.c.b16 %v515_v60, %v514_v59  ;;  %v491_v14 = vadd.f32 %v489_v10, %v485_v3  ;;  %v432_v25 = vstv %s954_s17  ;;  %v429_v27 = vmul.f32 %v1277_v5, %v428_v22  ;;  %v1060_v60 = vld [vmem:[%s1402_s6 + $0x20] sm:$0xff]  ;;  %s343_s17 = scalar_lea.vmem %s1403_s7, %s1045_s14 }
  0x2d   : > { %v492_v15 = vadd.f32 %v490_v11, %v486_v9  ;;  %v425_v17 = vpack.c.bf16 %v423_v12, %v423_v12  ;;  %v426_v18 = vpack.c.bf16 %v424_v13, %v424_v13  ;;  %v430_v30 = vmul.f32 %v1279_v6, %v428_v22  ;;  %v1057_v11 = vld [vmem:[%s1402_s6 + $0x8] sm:$0xff] }
  0x2e   : > { %v493_v20 = vpack.c.bf16 %v491_v14, %v491_v14  ;;  %v496_v31 = vstv %s960_s18  ;;  %v433_v33 = vmul.f32 %v1281_v7, %v432_v25  ;;  %v434_v34 = vmul.f32 %v1283_v8, %v432_v25 }
  0x2f   : > { %v494_v21 = vpack.c.bf16 %v492_v15, %v492_v15  ;;  %v451_v23 = vunpack.c.l.b16 %v425_v17  ;;  %v452_v24 = vunpack.c.l.b16 %v426_v18  ;;  %v500_v35 = vstv %s961_s21  ;;  %723 = vmatpush.bf16.msra.mxu2 %v1062_v57 }
  0x30   : > { %v519_v28 = vunpack.c.l.b16 %v493_v20  ;;  %v497_v36 = vmul.f32 %v1277_v5, %v496_v31  ;;  %v498_v38 = vmul.f32 %v1279_v6, %v496_v31  ;;  %v501_v39 = vmul.f32 %v1281_v7, %v500_v35 }
  0x31   : > { %v520_v29 = vunpack.c.l.b16 %v494_v21  ;;  %v453_v32 = vpack.c.b16 %v452_v24, %v451_v23  ;;  %v502_v40 = vmul.f32 %v1283_v8, %v500_v35  ;;  %v435_v41 = vadd.f32 %v433_v33, %v429_v27  ;;  %v1052_v8 = vld [vmem:[%s1401_s5 + $0x20] sm:$0xff] }
  0x32   : > { %v436_v42 = vadd.f32 %v434_v34, %v430_v30  ;;  %v503_v43 = vadd.f32 %v501_v39, %v497_v36  ;;  %804 = vmatpush.bf16.msra.mxu3 %v1052_v8 }
  0x33   : > { %v521_v37 = vpack.c.b16 %v520_v29, %v519_v28  ;;  %v504_v44 = vadd.f32 %v502_v40, %v498_v38  ;;  %v437_v45 = vpack.c.bf16 %v435_v41, %v435_v41  ;;  %724 = vmatpush.bf16.msra.mxu2 %v1061_v58 }
  0x34   : > { %v438_v46 = vpack.c.bf16 %v436_v42, %v436_v42  ;;  %v505_v47 = vpack.c.bf16 %v503_v43, %v503_v43 }
  0x35   : > { %v506_v48 = vpack.c.bf16 %v504_v44, %v504_v44  ;;  %v456_v5 = vunpack.c.l.b16 %v437_v45 }
  0x36   : > { %v457_v49 = vunpack.c.l.b16 %v438_v46  ;;  %v524_v50 = vunpack.c.l.b16 %v505_v47  ;;  %805 = vmatpush.bf16.msra.mxu3 %v1051_v52 }
  0x37   : > { %967 = vmatmul.msk.bf16.gmra.mxu0 %vm533_vm0, %v448_v63  ;;  %v525_v6 = vunpack.c.l.b16 %v506_v48  ;;  %725 = vmatpush.bf16.msra.mxu2 %v1060_v60  ;;  %v1059_v63 = vld [vmem:[%s1402_s6 + $0x18] sm:$0xff] }
  0x38   : > { %975 = vmatmul.msk.bf16.gmra.mxu1 %vm533_vm0, %v516_v4  ;;  %v458_v51 = vpack.c.b16 %v457_v49, %v456_v5 }
  0x39   : > { %v526_v7 = vpack.c.b16 %v525_v6, %v524_v50 }
  0x3a   : > { %806 = vmatpush.bf16.msra.mxu3 %v1050_v53 }
  0x3b   : > { %726 = vmatpush.bf16.msra.mxu2 %v1059_v63 }
  0x3e   : > { %807 = vmatpush.bf16.msra.mxu3 %v1049_v54 }
  0x3f   : > { %727 = vmatpush.bf16.msra.mxu2 %v1058_v2 }
  0x42   : > { %808 = vmatpush.bf16.msra.mxu3 %v1048_v55 }
  0x43   : > { %728 = vmatpush.bf16.msra.mxu2 %v1057_v11 }
  0x47   : > { %968 = vmatmul.msk.bf16.gmra.mxu0 %vm533_vm0, %v453_v32  ;;  %729 = vmatpush.bf16.msra.mxu2 %v1056_v16 }
  0x48   : > { %976 = vmatmul.msk.bf16.gmra.mxu1 %vm533_vm0, %v521_v37 }
  0x57   : > { %969 = vmatmul.msk.bf16.gmra.mxu0 %vm533_vm0, %v458_v51 }
  0x58   : > { %977 = vmatmul.msk.bf16.gmra.mxu1 %vm533_vm0, %v526_v7 }
  0xa4   : > { %v555_v59 = vpop.f32.mrf.mxu0 }
  0xa5   : > { %v602_v61 = vpop.f32.mrf.mxu1 }
  0xa6   : > { %v622_v62 = vsub.f32 %v555_v59, %v602_v61 }
  0xa8   : > { %v638_v0 = vmul.f32 0.05, %v622_v62  ;;  %vm630_vm1 = vcmp.ge.f32.partialorder %v622_v62, 0.0 }
  0xaa   : > { %v646_v9 = vsel %vm630_vm1, %v622_v62, %v638_v0 }
  0xab   : > { %v654_v12 = vpack.c.bf16 %v646_v9, %v646_v9 }
  0xac   : > { %v557_v1 = vpop.f32.mrf.mxu0 }
  0xad   : > { %v604_v3 = vpop.f32.mrf.mxu1  ;;  %v745_v18 = vunpack.c.l.b16 %v654_v12 }
  0xae   : > { %v623_v4 = vsub.f32 %v557_v1, %v604_v3 }
  0xb0   : > { %vm631_vm2 = vcmp.ge.f32.partialorder %v623_v4, 0.0  ;;  %v639_v10 = vmul.f32 0.05, %v623_v4 }
  0xb2   : > { %v647_v14 = vsel %vm631_vm2, %v623_v4, %v639_v10 }
  0xb3   : > { %v655_v15 = vpack.c.bf16 %v647_v14, %v647_v14 }
  0xb4   : > { %v560_v13 = vpop.f32.mrf.mxu0 }
  0xb5   : > { %v607_v17 = vpop.f32.mrf.mxu1  ;;  %v746_v19 = vunpack.c.l.b16 %v655_v15 }
  0xb6   : > { %v624_v20 = vsub.f32 %v560_v13, %v607_v17 }
  0xb7   : > { %v749_v21 = vpack.c.b16 %v746_v19, %v745_v18 }
  0xb8   : > { %v640_v22 = vmul.f32 0.05, %v624_v20  ;;  %vm632_vm3 = vcmp.ge.f32.partialorder %v624_v20, 0.0 }
  0xb9   : > { %809 = vmatmul.bf16.vlgmr.msra.gmra.mxu3 %v749_v21 }
  0xba   : > { %v648_v26 = vsel %vm632_vm3, %v624_v20, %v640_v22 }
  0xbb   : > { %v656_v28 = vpack.c.bf16 %v648_v26, %v648_v26 }
  0xbc   : > { %v562_v23 = vpop.f32.mrf.mxu0 }
  0xbd   : > { %v609_v24 = vpop.f32.mrf.mxu1  ;;  %v747_v33 = vunpack.c.l.b16 %v656_v28 }
  0xbe   : > { %v625_v25 = vsub.f32 %v562_v23, %v609_v24 }
  0xc0   : > { %vm633_vm4 = vcmp.ge.f32.partialorder %v625_v25, 0.0  ;;  %v641_v27 = vmul.f32 0.05, %v625_v25 }
  0xc2   : > { %v649_v30 = vsel %vm633_vm4, %v625_v25, %v641_v27 }
  0xc3   : > { %v657_v31 = vpack.c.bf16 %v649_v30, %v649_v30 }
  0xc4   : > { %v565_v29 = vpop.f32.mrf.mxu0 }
  0xc5   : > { %v612_v32 = vpop.f32.mrf.mxu1  ;;  %v748_v34 = vunpack.c.l.b16 %v657_v31 }
  0xc6   : > { %v626_v35 = vsub.f32 %v565_v29, %v612_v32 }
  0xc7   : > { %v750_v36 = vpack.c.b16 %v748_v34, %v747_v33 }
  0xc8   : > { %v642_v37 = vmul.f32 0.05, %v626_v35  ;;  %vm634_vm5 = vcmp.ge.f32.partialorder %v626_v35, 0.0 }
  0xc9   : > { %814 = vmatmul.bf16.gmra.mxu3 %v750_v36 }
  0xca   : > { %v650_v41 = vsel %vm634_vm5, %v626_v35, %v642_v37 }
  0xcb   : > { %v658_v43 = vpack.c.bf16 %v650_v41, %v650_v41 }
  0xcc   : > { %v567_v38 = vpop.f32.mrf.mxu0 }
  0xcd   : > { %v614_v39 = vpop.f32.mrf.mxu1  ;;  %v666_v48 = vunpack.c.l.b16 %v658_v43 }
  0xce   : > { %v627_v40 = vsub.f32 %v567_v38, %v614_v39 }
  0xd0   : > { %vm635_vm6 = vcmp.ge.f32.partialorder %v627_v40, 0.0  ;;  %v643_v42 = vmul.f32 0.05, %v627_v40 }
  0xd2   : > { %v651_v45 = vsel %vm635_vm6, %v627_v40, %v643_v42 }
  0xd3   : > { %v659_v46 = vpack.c.bf16 %v651_v45, %v651_v45 }
  0xd4   : > { %v570_v44 = vpop.f32.mrf.mxu0 }
  0xd5   : > { %v617_v47 = vpop.f32.mrf.mxu1  ;;  %v667_v5 = vunpack.c.l.b16 %v659_v46 }
  0xd6   : > { %v628_v49 = vsub.f32 %v570_v44, %v617_v47 }
  0xd7   : > { %v670_v50 = vpack.c.b16 %v667_v5, %v666_v48 }
  0xd8   : > { %v644_v6 = vmul.f32 0.05, %v628_v49  ;;  %vm636_vm7 = vcmp.ge.f32.partialorder %v628_v49, 0.0 }
  0xd9   : > { %730 = vmatmul.bf16.vlgmr.msra.gmra.mxu2 %v670_v50 }
  0xda   : > { %v652_v52 = vsel %vm636_vm7, %v628_v49, %v644_v6 }
  0xdb   : > { %v660_v54 = vpack.c.bf16 %v652_v52, %v652_v52 }
  0xdc   : > { %v572_v51 = vpop.f32.mrf.mxu0 }
  0xdd   : > { %v619_v7 = vpop.f32.mrf.mxu1  ;;  %v668_v57 = vunpack.c.l.b16 %v660_v54 }
  0xde   : > { %v629_v8 = vsub.f32 %v572_v51, %v619_v7 }
  0xe0   : > { %vm637_vm8 = vcmp.ge.f32.partialorder %v629_v8, 0.0  ;;  %v645_v53 = vmul.f32 0.05, %v629_v8 }
  0xe2   : > { %v653_v55 = vsel %vm637_vm8, %v629_v8, %v645_v53 }
  0xe3   : > { %v661_v56 = vpack.c.bf16 %v653_v55, %v653_v55 }
  0xe5   : > { %v669_v58 = vunpack.c.l.b16 %v661_v56 }
  0xe7   : > { %v671_v59 = vpack.c.b16 %v669_v58, %v668_v57 }
  0xe9   : > { %735 = vmatmul.bf16.gmra.mxu2 %v671_v59 }
 0x13c   : > { %v810_v60 = vpop.f32.mrf.mxu3 }
 0x144   : > { %v812_v63 = vpop.f32.mrf.mxu3 }
 0x14c   : > { %v815_v2 = vpop.f32.mrf.mxu3 }
 0x154   : > { %v817_v9 = vpop.f32.mrf.mxu3 }
 0x15c   : > { %v731_v61 = vpop.f32.mrf.mxu2 }
 0x15d   : > { %v811_v62 = vadd.f32 %v810_v60, %v731_v61 }
 0x15f   : > { %820 = vst.msk [vmem:[%s343_s17] sm:$0xff] %vm533_vm0, %v811_v62 }
 0x164   : > { %v733_v0 = vpop.f32.mrf.mxu2 }
 0x165   : > { %v813_v1 = vadd.f32 %v812_v63, %v733_v0 }
 0x167   : > { %821 = vst.msk [vmem:[%s343_s17 + $0x8] sm:$0xff] %vm533_vm0, %v813_v1 }
 0x16c   : > { %v736_v3 = vpop.f32.mrf.mxu2 }
 0x16d   : > { %v816_v4 = vadd.f32 %v815_v2, %v736_v3 }
 0x16f   : > { %822 = vst.msk [vmem:[%s343_s17 + $0x10] sm:$0xff] %vm533_vm0, %v816_v4 }
 0x174   : > { %v738_v10 = vpop.f32.mrf.mxu2 }
 0x175   : > { %v818_v11 = vadd.f32 %v817_v9, %v738_v10 }
 0x177   : > { %823 = vst.msk [vmem:[%s343_s17 + $0x18] sm:$0xff] %vm533_vm0, %v818_v11 }
 0x178 PF: > { %s19_s26 = sadd.s32 1, %s1178_s26   ;;  %s1405_s24 = smov %s1174_s25 }
 0x179   : > { %p16_p8 = scmp.ge.s32.totalorder %s19_s26, 4   ;;  %s1406_s25 = smov %s1408_s28 }
 0x17b   :  { %18 = sbr.rel (!%p16_p8) target bundleno = 3 (0x3), region = 88 }
 0x180   :  { %854 = vsyncpa [#allocation3], 1 }
 0x181   :  { %856 = vsyncpa [#allocation3 + $0x1], 1 }
 0x182   :  { %857 = vsyncpa [#allocation5], 1 }

</bundles_post_ra>
